<compile_context>
chip_gen: v7x
topology: tpu7x:2x2x1
jax: 0.10.0
libtpu: 0.0.40
codegen_flags: <defaults>
</compile_context>

<pallas_src>
import functools

import jax
import jax.numpy as jnp
from jax.experimental import pallas as pl
from jax.experimental.pallas import tpu as pltpu


def _gelu_tanh(x):
    # tanh-approximate GELU (EUP-friendly).
    # TODO(synk): PyTorch nn.GELU() defaults to the exact erf form; this is the
    # approximate='tanh' variant (matches the in-script reference exactly,
    # matches exact-erf PyTorch to ~1e-3).
    return 0.5 * x * (1.0 + jnp.tanh(0.7978845608028654 * (x + 0.044715 * x * x * x)))


def _vmem_capacity_bytes():
    try:
        cap = int(pltpu.get_tpu_info().vmem_capacity_bytes)
        if cap > 0:
            return cap
    except Exception:
        pass
    return 64 * 1024 * 1024  # v7x floor; conservative everywhere


def _pick_channel_block(N, C, H, W, K, itemsize):
    """Largest channel block (multiple of 128 dividing C when possible) whose
    per-step working set (blocks + halo scratch + temporaries) fits well inside
    this generation's VMEM.  On N == 1, prefer a split so the grid has >= 2
    steps (keeps both v7x TensorCores busy)."""
    if C % 128 != 0:
        return C  # small / ragged channel count: take it whole
    pad = (K - 1) // 2
    w_off = ((pad + 7) // 8) * 8
    budget = _vmem_capacity_bytes() // 3  # ~21 MiB on v7x, ~42 MiB on v5e/v6e

    def fits(cb):
        ws = (2 * 2 * H * W * cb * itemsize                        # x-in + out, double-buffered
              + (H + 2 * pad) * (w_off + W + pad) * cb * itemsize  # halo scratch plane
              + 2 * 2 * (K * K + 3) * cb * 4                       # per-channel params
              + 2 * H * W * cb * 4                                 # compiler-materialized temps
              + (2 << 20))                                         # fixed slack
        return ws <= budget

    cands = [128 * m for m in range(1, C // 128 + 1)
             if C % (128 * m) == 0 and fits(128 * m)]
    if not cands:
        return 128
    if N == 1:
        split = [cb for cb in cands if C // cb >= 2]
        if split:
            return max(split)  # grid still splittable across 2 TCs (v7x)
    return max(cands)


def _pick_rows_per_strip(H, W, Cb, K, itemsize):
    """Rows per output strip so acc (f32) + one kw-slab stay ~vreg-resident."""
    lanes = ((Cb + 127) // 128) * 128
    sub = ((W + 7) // 8) * 8
    budget = 160 * 1024  # ~40 vregs of live data per strip
    best = 1
    for r in (2, 4, 8):
        if H % r:
            continue
        ws = r * sub * lanes * 4 + (r + K - 1) * sub * lanes * itemsize
        if ws <= budget:
            best = r
    return best


def _make_kernel(H, W, K, Cb, R, x_dtype):
    pad = (K - 1) // 2
    # Sublane-aligned left halo offset so the interior store is aligned.
    w_off = ((pad + 7) // 8) * 8
    W_halo = w_off + W + pad          # only `pad` extra columns are read right
    n_strips = H // R
    slab_rows = R + K - 1

    def strip(h0, xp_ref, o_ref, wts, bvec, scvec, shvec):
        # h0 is a Python int (static path) or a traced int32 (fori_loop path).
        acc = jnp.zeros((R, W, Cb), jnp.float32)
        # kw shift hoisted: one sublane-offset slab load per kw, kh slices are
        # free static slices of the in-register slab (H is an outer dim).
        for kw in range(K):
            slab = xp_ref[pl.ds(h0, slab_rows), pl.ds(w_off - pad + kw, W), :]
            for kh in range(K):
                t = kh * K + kw
                acc = acc + wts[t] * slab[kh:kh + R].astype(jnp.float32)
        acc = acc + bvec                                   # conv bias
        y = _gelu_tanh(acc) * scvec + shvec                # GELU + folded BN
        # Residual read from the scratch interior (no long-lived copy of x).
        res = xp_ref[pl.ds(h0 + pad, R), pl.ds(w_off, W), :].astype(jnp.float32)
        o_ref[pl.ds(h0, R), :, :] = (y + res).astype(o_ref.dtype)

    def kernel(w_ref, b_ref, sc_ref, sh_ref, x_ref, o_ref, xp_ref):
        # Zero only the halo frame that is actually read (not the full plane).
        if pad > 0:
            zrow = jnp.zeros((pad, W_halo, Cb), x_dtype)
            xp_ref[0:pad, :, :] = zrow
            xp_ref[pad + H:pad + H + pad, :, :] = zrow
            xp_ref[pad:pad + H, 0:w_off, :] = jnp.zeros((H, w_off, Cb), x_dtype)
            xp_ref[pad:pad + H, w_off + W:w_off + W + pad, :] = (
                jnp.zeros((H, pad, Cb), x_dtype))

        # Stage x once into the zero-framed halo plane (aligned interior store),
        # kept in the input dtype (bf16 stays bf16; cast at the FMA).
        xp_ref[pad:pad + H, w_off:w_off + W, :] = x_ref[...]

        # Per-channel params loaded once per grid step (lane-dense f32).
        wts = w_ref[...]        # (K*K, Cb)
        bvec = b_ref[0]         # (Cb,)
        scvec = sc_ref[0]
        shvec = sh_ref[0]

        if n_strips * K * K <= 128:
            for s in range(n_strips):            # fully static strip offsets
                strip(s * R, xp_ref, o_ref, wts, bvec, scvec, shvec)
        else:
            def body(s, carry):                  # strip-scoped, no program blow-up
                strip(s * R, xp_ref, o_ref, wts, bvec, scvec, shvec)
                return carry
            jax.lax.fori_loop(0, n_strips, body, 0)

    return kernel, pad, w_off


@functools.partial(jax.jit, static_argnames=("K",))
def residual_convmixer_block(x, w, bias, bn_scale, bn_shift, *, K):
    """Fused Residual(ConvMixer spatial-mixing block) in NHWC layout.

    x: (N, H, W, C).  w: (C, K, K) depthwise filters (PyTorch layout).
    bias / bn_scale / bn_shift: (C,).
    """
    assert K % 2 == 1, "padding='same' fusion assumes odd kernel size"
    N, H, W, C = x.shape
    Cb = _pick_channel_block(N, C, H, W, K, x.dtype.itemsize)
    R = _pick_rows_per_strip(H, W, Cb, K, x.dtype.itemsize)
    kernel, pad, w_off = _make_kernel(H, W, K, Cb, R, x.dtype)

    # Per-channel parameters as lane-dense f32 VMEM arrays.
    w_kc = jnp.transpose(w, (1, 2, 0)).reshape(K * K, C).astype(jnp.float32)
    b2 = bias.reshape(1, C).astype(jnp.float32)
    sc2 = bn_scale.reshape(1, C).astype(jnp.float32)
    sh2 = bn_shift.reshape(1, C).astype(jnp.float32)

    vmem_cap = _vmem_capacity_bytes()

    # Grid: channel blocks outer, batch inner -> param blocks keep the same
    # block index across the inner axis and are not re-DMA'd every step.
    return pl.pallas_call(
        kernel,
        out_shape=jax.ShapeDtypeStruct((N, H, W, C), x.dtype),
        grid=(C // Cb, N),
        in_specs=[
            pl.BlockSpec((K * K, Cb), lambda c, n: (0, c)),          # depthwise weights
            pl.BlockSpec((1, Cb), lambda c, n: (0, c)),              # conv bias
            pl.BlockSpec((1, Cb), lambda c, n: (0, c)),              # BN scale
            pl.BlockSpec((1, Cb), lambda c, n: (0, c)),              # BN shift
            pl.BlockSpec((None, H, W, Cb), lambda c, n: (n, 0, 0, c)),  # x
        ],
        out_specs=pl.BlockSpec((None, H, W, Cb), lambda c, n: (n, 0, 0, c)),
        scratch_shapes=[
            pltpu.VMEM((H + 2 * pad, w_off + W + pad, Cb), x.dtype),  # halo plane
        ],
        compiler_params=pltpu.CompilerParams(
            dimension_semantics=("parallel", "parallel"),
            vmem_limit_bytes=min(vmem_cap * 3 // 4, 96 * 1024 * 1024),
        ),
    )(w_kc, b2, sc2, sh2, x)


def reference(x, w, bias, bn_scale, bn_shift, *, K):
    """Pure-JAX reference: depthwise conv -> GELU -> folded BN -> + x (NHWC)."""
    N, H, W, C = x.shape
    filt = jnp.transpose(w, (1, 2, 0)).reshape(K, K, 1, C)
    conv = jax.lax.conv_general_dilated(
        x, filt, window_strides=(1, 1), padding="SAME",
        dimension_numbers=("NHWC", "HWIO", "NHWC"), feature_group_count=C)
    conv = conv + bias
    y = _gelu_tanh(conv) * bn_scale + bn_shift
    return y + x


if __name__ == "__main__":
    # Case 1: small ragged channel count (whole-C block, static strip loop).
    # Case 2: C % 128 == 0 blocked path, K=5 halo, dynamic fori_loop strip path,
    #         N==1 -> channel block split so the grid keeps >= 2 steps.
    cases = [
        (2, 4, 16, 16, 3),
        (1, 256, 32, 32, 5),
    ]
    for (N, C, H, W, K) in cases:
        key = jax.random.PRNGKey(0)
        kx, kw_, kb, kg, kbeta = jax.random.split(key, 5)

        # NHWC activations (channels on the lane axis inside the kernel).
        x = jax.random.normal(kx, (N, H, W, C), dtype=jnp.float32)

        # Synthetic params for fn = Conv2d(C,C,K,groups=C) -> GELU -> BN(C).
        w = jax.random.normal(kw_, (C, K, K), dtype=jnp.float32) * 0.2
        bias = jax.random.normal(kb, (C,), dtype=jnp.float32) * 0.1
        gamma = 1.0 + 0.1 * jax.random.normal(kg, (C,), dtype=jnp.float32)
        beta = 0.1 * jax.random.normal(kbeta, (C,), dtype=jnp.float32)
        running_mean = jnp.zeros((C,), jnp.float32)   # PyTorch BN eval defaults
        running_var = jnp.ones((C,), jnp.float32)
        eps = 1e-5
        bn_scale = gamma / jnp.sqrt(running_var + eps)
        bn_shift = beta - running_mean * bn_scale

        ref = reference(x, w, bias, bn_scale, bn_shift, K=K)

        out = residual_convmixer_block(x, w, bias, bn_scale, bn_shift, K=K)
        out = jax.block_until_ready(out)

        assert out.shape == x.shape and out.dtype == x.dtype
        assert jnp.allclose(out, ref, atol=1e-4, rtol=1e-4), (
            f"mismatch vs JAX reference for case {(N, C, H, W, K)}")

    print("KERNEL_OK")
</pallas_src>

<mosaic_0001>
module attributes {stable_mosaic.version = 11 : i64} {
  func.func @kernel(%arg0: i32, %arg1: i32, %arg2: memref<9x4xf32, #tpu.memory_space<vmem>>, %arg3: memref<1x4xf32, #tpu.memory_space<vmem>>, %arg4: memref<1x4xf32, #tpu.memory_space<vmem>>, %arg5: memref<1x4xf32, #tpu.memory_space<vmem>>, %arg6: memref<1x16x16x4xf32, #tpu.memory_space<vmem>>, %arg7: memref<1x16x16x4xf32, #tpu.memory_space<vmem>>, %arg8: memref<18x25x4xf32, #tpu.memory_space<vmem>>) attributes {dimension_semantics = [#tpu.dimension_semantics<parallel>, #tpu.dimension_semantics<parallel>], iteration_bounds = array<i64: 1, 2>, scalar_prefetch = 0 : i64, scratch_operands = 1 : i64, tpu.core_type = #tpu.core_type<tc>, window_params = [{transform_indices = @transform_0, window_bounds = array<i64: 9, 4>}, {transform_indices = @transform_1, window_bounds = array<i64: 1, 4>}, {transform_indices = @transform_2, window_bounds = array<i64: 1, 4>}, {transform_indices = @transform_3, window_bounds = array<i64: 1, 4>}, {transform_indices = @transform_4, window_bounds = array<i64: 1, 16, 16, 4>}, {transform_indices = @transform_5, window_bounds = array<i64: 1, 16, 16, 4>}]} {
    %cst = arith.constant 0.000000e+00 : f32
    %0 = vector.broadcast %cst : f32 to vector<1x25x4xf32>
    %c0 = arith.constant 0 : index
    %c0_0 = arith.constant 0 : index
    %c0_1 = arith.constant 0 : index
    %1 = vector.load %arg8[%c0, %c0_0, %c0_1] : memref<18x25x4xf32, #tpu.memory_space<vmem>>, vector<1x25x4xf32>
    tpu.vector_store %arg8[%c0, %c0_0, %c0_1], %0 {strides = array<i32>} : memref<18x25x4xf32, #tpu.memory_space<vmem>>, vector<1x25x4xf32>,
    %c17 = arith.constant 17 : index
    %c0_2 = arith.constant 0 : index
    %c0_3 = arith.constant 0 : index
    %2 = vector.load %arg8[%c17, %c0_2, %c0_3] : memref<18x25x4xf32, #tpu.memory_space<vmem>>, vector<1x25x4xf32>
    tpu.vector_store %arg8[%c17, %c0_2, %c0_3], %0 {strides = array<i32>} : memref<18x25x4xf32, #tpu.memory_space<vmem>>, vector<1x25x4xf32>,
    %cst_4 = arith.constant 0.000000e+00 : f32
    %3 = vector.broadcast %cst_4 : f32 to vector<16x8x4xf32>
    %c1 = arith.constant 1 : index
    %c0_5 = arith.constant 0 : index
    %c0_6 = arith.constant 0 : index
    %4 = vector.load %arg8[%c1, %c0_5, %c0_6] : memref<18x25x4xf32, #tpu.memory_space<vmem>>, vector<16x8x4xf32>
    tpu.vector_store %arg8[%c1, %c0_5, %c0_6], %3 {strides = array<i32>} : memref<18x25x4xf32, #tpu.memory_space<vmem>>, vector<16x8x4xf32>,
    %cst_7 = arith.constant 0.000000e+00 : f32
    %5 = vector.broadcast %cst_7 : f32 to vector<16x1x4xf32>
    %c1_8 = arith.constant 1 : index
    %c24 = arith.constant 24 : index
    %c0_9 = arith.constant 0 : index
    %6 = vector.load %arg8[%c1_8, %c24, %c0_9] : memref<18x25x4xf32, #tpu.memory_space<vmem>>, vector<16x1x4xf32>
    tpu.vector_store %arg8[%c1_8, %c24, %c0_9], %5 {strides = array<i32>} : memref<18x25x4xf32, #tpu.memory_space<vmem>>, vector<16x1x4xf32>,
    %c0_10 = arith.constant 0 : index
    %c0_11 = arith.constant 0 : index
    %c0_12 = arith.constant 0 : index
    %c0_13 = arith.constant 0 : index
    %7 = vector.load %arg6[%c0_10, %c0_11, %c0_12, %c0_13] : memref<1x16x16x4xf32, #tpu.memory_space<vmem>>, vector<1x16x16x4xf32>
    %8 = vector.shape_cast %7 : vector<1x16x16x4xf32> to vector<16x16x4xf32>
    %c1_14 = arith.constant 1 : index
    %c8 = arith.constant 8 : index
    %c0_15 = arith.constant 0 : index
    %9 = vector.load %arg8[%c1_14, %c8, %c0_15] : memref<18x25x4xf32, #tpu.memory_space<vmem>>, vector<16x16x4xf32>
    tpu.vector_store %arg8[%c1_14, %c8, %c0_15], %8 {strides = array<i32>} : memref<18x25x4xf32, #tpu.memory_space<vmem>>, vector<16x16x4xf32>,
    %c0_16 = arith.constant 0 : index
    %c0_17 = arith.constant 0 : index
    %10 = vector.load %arg2[%c0_16, %c0_17] : memref<9x4xf32, #tpu.memory_space<vmem>>, vector<9x4xf32>
    %c0_18 = arith.constant 0 : index
    %c0_19 = arith.constant 0 : index
    %11 = vector.load %arg3[%c0_18, %c0_19] : memref<1x4xf32, #tpu.memory_space<vmem>>, vector<1x4xf32>
    %12 = vector.shape_cast %11 : vector<1x4xf32> to vector<4xf32>
    %c0_20 = arith.constant 0 : index
    %c0_21 = arith.constant 0 : index
    %13 = vector.load %arg4[%c0_20, %c0_21] : memref<1x4xf32, #tpu.memory_space<vmem>>, vector<1x4xf32>
    %14 = vector.shape_cast %13 : vector<1x4xf32> to vector<4xf32>
    %c0_22 = arith.constant 0 : index
    %c0_23 = arith.constant 0 : index
    %15 = vector.load %arg5[%c0_22, %c0_23] : memref<1x4xf32, #tpu.memory_space<vmem>>, vector<1x4xf32>
    %16 = vector.shape_cast %15 : vector<1x4xf32> to vector<4xf32>
    %cst_24 = arith.constant 0.000000e+00 : f32
    %17 = vector.broadcast %cst_24 : f32 to vector<8x16x4xf32>
    %c0_25 = arith.constant 0 : index
    %c7 = arith.constant 7 : index
    %c0_26 = arith.constant 0 : index
    %18 = vector.load %arg8[%c0_25, %c7, %c0_26] : memref<18x25x4xf32, #tpu.memory_space<vmem>>, vector<10x16x4xf32>
    %19 = vector.extract_strided_slice %10 {offsets = [0, 0], sizes = [1, 4], strides = [1, 1]} : vector<9x4xf32> to vector<1x4xf32>
    %20 = vector.shape_cast %19 : vector<1x4xf32> to vector<4xf32>
    %21 = vector.extract_strided_slice %18 {offsets = [0, 0, 0], sizes = [8, 16, 4], strides = [1, 1, 1]} : vector<10x16x4xf32> to vector<8x16x4xf32>
    %22 = vector.shape_cast %20 : vector<4xf32> to vector<1x1x4xf32>
    %23 = vector.broadcast %22 : vector<1x1x4xf32> to vector<8x16x4xf32>
    %24 = arith.mulf %23, %21 : vector<8x16x4xf32>
    %25 = arith.addf %17, %24 : vector<8x16x4xf32>
    %26 = vector.extract_strided_slice %10 {offsets = [3, 0], sizes = [1, 4], strides = [1, 1]} : vector<9x4xf32> to vector<1x4xf32>
    %27 = vector.shape_cast %26 : vector<1x4xf32> to vector<4xf32>
    %28 = vector.extract_strided_slice %18 {offsets = [1, 0, 0], sizes = [8, 16, 4], strides = [1, 1, 1]} : vector<10x16x4xf32> to vector<8x16x4xf32>
    %29 = vector.shape_cast %27 : vector<4xf32> to vector<1x1x4xf32>
    %30 = vector.broadcast %29 : vector<1x1x4xf32> to vector<8x16x4xf32>
    %31 = arith.mulf %30, %28 : vector<8x16x4xf32>
    %32 = arith.addf %25, %31 : vector<8x16x4xf32>
    %33 = vector.extract_strided_slice %10 {offsets = [6, 0], sizes = [1, 4], strides = [1, 1]} : vector<9x4xf32> to vector<1x4xf32>
    %34 = vector.shape_cast %33 : vector<1x4xf32> to vector<4xf32>
    %35 = vector.extract_strided_slice %18 {offsets = [2, 0, 0], sizes = [8, 16, 4], strides = [1, 1, 1]} : vector<10x16x4xf32> to vector<8x16x4xf32>
    %36 = vector.shape_cast %34 : vector<4xf32> to vector<1x1x4xf32>
    %37 = vector.broadcast %36 : vector<1x1x4xf32> to vector<8x16x4xf32>
    %38 = arith.mulf %37, %35 : vector<8x16x4xf32>
    %39 = arith.addf %32, %38 : vector<8x16x4xf32>
    %c0_27 = arith.constant 0 : index
    %c8_28 = arith.constant 8 : index
    %c0_29 = arith.constant 0 : index
    %40 = vector.load %arg8[%c0_27, %c8_28, %c0_29] : memref<18x25x4xf32, #tpu.memory_space<vmem>>, vector<10x16x4xf32>
    %41 = vector.extract_strided_slice %10 {offsets = [1, 0], sizes = [1, 4], strides = [1, 1]} : vector<9x4xf32> to vector<1x4xf32>
    %42 = vector.shape_cast %41 : vector<1x4xf32> to vector<4xf32>
    %43 = vector.extract_strided_slice %40 {offsets = [0, 0, 0], sizes = [8, 16, 4], strides = [1, 1, 1]} : vector<10x16x4xf32> to vector<8x16x4xf32>
    %44 = vector.shape_cast %42 : vector<4xf32> to vector<1x1x4xf32>
    %45 = vector.broadcast %44 : vector<1x1x4xf32> to vector<8x16x4xf32>
    %46 = arith.mulf %45, %43 : vector<8x16x4xf32>
    %47 = arith.addf %39, %46 : vector<8x16x4xf32>
    %48 = vector.extract_strided_slice %10 {offsets = [4, 0], sizes = [1, 4], strides = [1, 1]} : vector<9x4xf32> to vector<1x4xf32>
    %49 = vector.shape_cast %48 : vector<1x4xf32> to vector<4xf32>
    %50 = vector.extract_strided_slice %40 {offsets = [1, 0, 0], sizes = [8, 16, 4], strides = [1, 1, 1]} : vector<10x16x4xf32> to vector<8x16x4xf32>
    %51 = vector.shape_cast %49 : vector<4xf32> to vector<1x1x4xf32>
    %52 = vector.broadcast %51 : vector<1x1x4xf32> to vector<8x16x4xf32>
    %53 = arith.mulf %52, %50 : vector<8x16x4xf32>
    %54 = arith.addf %47, %53 : vector<8x16x4xf32>
    %55 = vector.extract_strided_slice %10 {offsets = [7, 0], sizes = [1, 4], strides = [1, 1]} : vector<9x4xf32> to vector<1x4xf32>
    %56 = vector.shape_cast %55 : vector<1x4xf32> to vector<4xf32>
    %57 = vector.extract_strided_slice %40 {offsets = [2, 0, 0], sizes = [8, 16, 4], strides = [1, 1, 1]} : vector<10x16x4xf32> to vector<8x16x4xf32>
    %58 = vector.shape_cast %56 : vector<4xf32> to vector<1x1x4xf32>
    %59 = vector.broadcast %58 : vector<1x1x4xf32> to vector<8x16x4xf32>
    %60 = arith.mulf %59, %57 : vector<8x16x4xf32>
    %61 = arith.addf %54, %60 : vector<8x16x4xf32>
    %c0_30 = arith.constant 0 : index
    %c9 = arith.constant 9 : index
    %c0_31 = arith.constant 0 : index
    %62 = vector.load %arg8[%c0_30, %c9, %c0_31] : memref<18x25x4xf32, #tpu.memory_space<vmem>>, vector<10x16x4xf32>
    %63 = vector.extract_strided_slice %10 {offsets = [2, 0], sizes = [1, 4], strides = [1, 1]} : vector<9x4xf32> to vector<1x4xf32>
    %64 = vector.shape_cast %63 : vector<1x4xf32> to vector<4xf32>
    %65 = vector.extract_strided_slice %62 {offsets = [0, 0, 0], sizes = [8, 16, 4], strides = [1, 1, 1]} : vector<10x16x4xf32> to vector<8x16x4xf32>
    %66 = vector.shape_cast %64 : vector<4xf32> to vector<1x1x4xf32>
    %67 = vector.broadcast %66 : vector<1x1x4xf32> to vector<8x16x4xf32>
    %68 = arith.mulf %67, %65 : vector<8x16x4xf32>
    %69 = arith.addf %61, %68 : vector<8x16x4xf32>
    %70 = vector.extract_strided_slice %10 {offsets = [5, 0], sizes = [1, 4], strides = [1, 1]} : vector<9x4xf32> to vector<1x4xf32>
    %71 = vector.shape_cast %70 : vector<1x4xf32> to vector<4xf32>
    %72 = vector.extract_strided_slice %62 {offsets = [1, 0, 0], sizes = [8, 16, 4], strides = [1, 1, 1]} : vector<10x16x4xf32> to vector<8x16x4xf32>
    %73 = vector.shape_cast %71 : vector<4xf32> to vector<1x1x4xf32>
    %74 = vector.broadcast %73 : vector<1x1x4xf32> to vector<8x16x4xf32>
    %75 = arith.mulf %74, %72 : vector<8x16x4xf32>
    %76 = arith.addf %69, %75 : vector<8x16x4xf32>
    %77 = vector.extract_strided_slice %10 {offsets = [8, 0], sizes = [1, 4], strides = [1, 1]} : vector<9x4xf32> to vector<1x4xf32>
    %78 = vector.shape_cast %77 : vector<1x4xf32> to vector<4xf32>
    %79 = vector.extract_strided_slice %62 {offsets = [2, 0, 0], sizes = [8, 16, 4], strides = [1, 1, 1]} : vector<10x16x4xf32> to vector<8x16x4xf32>
    %80 = vector.shape_cast %78 : vector<4xf32> to vector<1x1x4xf32>
    %81 = vector.broadcast %80 : vector<1x1x4xf32> to vector<8x16x4xf32>
    %82 = arith.mulf %81, %79 : vector<8x16x4xf32>
    %83 = arith.addf %76, %82 : vector<8x16x4xf32>
    %84 = vector.shape_cast %12 : vector<4xf32> to vector<1x1x4xf32>
    %85 = vector.broadcast %84 : vector<1x1x4xf32> to vector<8x16x4xf32>
    %86 = arith.addf %83, %85 : vector<8x16x4xf32>
    %cst_32 = arith.constant 5.000000e-01 : f32
    %87 = vector.broadcast %cst_32 : f32 to vector<8x16x4xf32>
    %88 = arith.mulf %87, %86 : vector<8x16x4xf32>
    %cst_33 = arith.constant 4.471500e-02 : f32
    %89 = vector.broadcast %cst_33 : f32 to vector<8x16x4xf32>
    %90 = arith.mulf %89, %86 : vector<8x16x4xf32>
    %91 = arith.mulf %90, %86 : vector<8x16x4xf32>
    %92 = arith.mulf %91, %86 : vector<8x16x4xf32>
    %93 = arith.addf %86, %92 : vector<8x16x4xf32>
    %cst_34 = arith.constant 0.797884583 : f32
    %94 = vector.broadcast %cst_34 : f32 to vector<8x16x4xf32>
    %95 = arith.mulf %94, %93 : vector<8x16x4xf32>
    %96 = math.tanh %95 : vector<8x16x4xf32>
    %cst_35 = arith.constant 1.000000e+00 : f32
    %97 = vector.broadcast %cst_35 : f32 to vector<8x16x4xf32>
    %98 = arith.addf %97, %96 : vector<8x16x4xf32>
    %99 = arith.mulf %88, %98 : vector<8x16x4xf32>
    %100 = vector.shape_cast %14 : vector<4xf32> to vector<1x1x4xf32>
    %101 = vector.broadcast %100 : vector<1x1x4xf32> to vector<8x16x4xf32>
    %102 = arith.mulf %99, %101 : vector<8x16x4xf32>
    %103 = vector.shape_cast %16 : vector<4xf32> to vector<1x1x4xf32>
    %104 = vector.broadcast %103 : vector<1x1x4xf32> to vector<8x16x4xf32>
    %105 = arith.addf %102, %104 : vector<8x16x4xf32>
    %c1_36 = arith.constant 1 : index
    %c8_37 = arith.constant 8 : index
    %c0_38 = arith.constant 0 : index
    %106 = vector.load %arg8[%c1_36, %c8_37, %c0_38] : memref<18x25x4xf32, #tpu.memory_space<vmem>>, vector<8x16x4xf32>
    %107 = arith.addf %105, %106 : vector<8x16x4xf32>
    %c0_39 = arith.constant 0 : index
    %c0_40 = arith.constant 0 : index
    %c0_41 = arith.constant 0 : index
    %c0_42 = arith.constant 0 : index
    %108 = vector.load %arg7[%c0_39, %c0_40, %c0_41, %c0_42] : memref<1x16x16x4xf32, #tpu.memory_space<vmem>>, vector<1x8x16x4xf32>
    %109 = vector.shape_cast %108 : vector<1x8x16x4xf32> to vector<8x16x4xf32>
    %110 = vector.shape_cast %107 : vector<8x16x4xf32> to vector<1x8x16x4xf32>
    tpu.vector_store %arg7[%c0_39, %c0_40, %c0_41, %c0_42], %110 {strides = array<i32>} : memref<1x16x16x4xf32, #tpu.memory_space<vmem>>, vector<1x8x16x4xf32>,
    %cst_43 = arith.constant 0.000000e+00 : f32
    %111 = vector.broadcast %cst_43 : f32 to vector<8x16x4xf32>
    %c8_44 = arith.constant 8 : index
    %c7_45 = arith.constant 7 : index
    %c0_46 = arith.constant 0 : index
    %112 = vector.load %arg8[%c8_44, %c7_45, %c0_46] : memref<18x25x4xf32, #tpu.memory_space<vmem>>, vector<10x16x4xf32>
    %113 = vector.extract_strided_slice %10 {offsets = [0, 0], sizes = [1, 4], strides = [1, 1]} : vector<9x4xf32> to vector<1x4xf32>
    %114 = vector.shape_cast %113 : vector<1x4xf32> to vector<4xf32>
    %115 = vector.extract_strided_slice %112 {offsets = [0, 0, 0], sizes = [8, 16, 4], strides = [1, 1, 1]} : vector<10x16x4xf32> to vector<8x16x4xf32>
    %116 = vector.shape_cast %114 : vector<4xf32> to vector<1x1x4xf32>
    %117 = vector.broadcast %116 : vector<1x1x4xf32> to vector<8x16x4xf32>
    %118 = arith.mulf %117, %115 : vector<8x16x4xf32>
    %119 = arith.addf %111, %118 : vector<8x16x4xf32>
    %120 = vector.extract_strided_slice %10 {offsets = [3, 0], sizes = [1, 4], strides = [1, 1]} : vector<9x4xf32> to vector<1x4xf32>
    %121 = vector.shape_cast %120 : vector<1x4xf32> to vector<4xf32>
    %122 = vector.extract_strided_slice %112 {offsets = [1, 0, 0], sizes = [8, 16, 4], strides = [1, 1, 1]} : vector<10x16x4xf32> to vector<8x16x4xf32>
    %123 = vector.shape_cast %121 : vector<4xf32> to vector<1x1x4xf32>
    %124 = vector.broadcast %123 : vector<1x1x4xf32> to vector<8x16x4xf32>
    %125 = arith.mulf %124, %122 : vector<8x16x4xf32>
    %126 = arith.addf %119, %125 : vector<8x16x4xf32>
    %127 = vector.extract_strided_slice %10 {offsets = [6, 0], sizes = [1, 4], strides = [1, 1]} : vector<9x4xf32> to vector<1x4xf32>
    %128 = vector.shape_cast %127 : vector<1x4xf32> to vector<4xf32>
    %129 = vector.extract_strided_slice %112 {offsets = [2, 0, 0], sizes = [8, 16, 4], strides = [1, 1, 1]} : vector<10x16x4xf32> to vector<8x16x4xf32>
    %130 = vector.shape_cast %128 : vector<4xf32> to vector<1x1x4xf32>
    %131 = vector.broadcast %130 : vector<1x1x4xf32> to vector<8x16x4xf32>
    %132 = arith.mulf %131, %129 : vector<8x16x4xf32>
    %133 = arith.addf %126, %132 : vector<8x16x4xf32>
    %c8_47 = arith.constant 8 : index
    %c8_48 = arith.constant 8 : index
    %c0_49 = arith.constant 0 : index
    %134 = vector.load %arg8[%c8_47, %c8_48, %c0_49] : memref<18x25x4xf32, #tpu.memory_space<vmem>>, vector<10x16x4xf32>
    %135 = vector.extract_strided_slice %10 {offsets = [1, 0], sizes = [1, 4], strides = [1, 1]} : vector<9x4xf32> to vector<1x4xf32>
    %136 = vector.shape_cast %135 : vector<1x4xf32> to vector<4xf32>
    %137 = vector.extract_strided_slice %134 {offsets = [0, 0, 0], sizes = [8, 16, 4], strides = [1, 1, 1]} : vector<10x16x4xf32> to vector<8x16x4xf32>
    %138 = vector.shape_cast %136 : vector<4xf32> to vector<1x1x4xf32>
    %139 = vector.broadcast %138 : vector<1x1x4xf32> to vector<8x16x4xf32>
    %140 = arith.mulf %139, %137 : vector<8x16x4xf32>
    %141 = arith.addf %133, %140 : vector<8x16x4xf32>
    %142 = vector.extract_strided_slice %10 {offsets = [4, 0], sizes = [1, 4], strides = [1, 1]} : vector<9x4xf32> to vector<1x4xf32>
    %143 = vector.shape_cast %142 : vector<1x4xf32> to vector<4xf32>
    %144 = vector.extract_strided_slice %134 {offsets = [1, 0, 0], sizes = [8, 16, 4], strides = [1, 1, 1]} : vector<10x16x4xf32> to vector<8x16x4xf32>
    %145 = vector.shape_cast %143 : vector<4xf32> to vector<1x1x4xf32>
    %146 = vector.broadcast %145 : vector<1x1x4xf32> to vector<8x16x4xf32>
    %147 = arith.mulf %146, %144 : vector<8x16x4xf32>
    %148 = arith.addf %141, %147 : vector<8x16x4xf32>
    %149 = vector.extract_strided_slice %10 {offsets = [7, 0], sizes = [1, 4], strides = [1, 1]} : vector<9x4xf32> to vector<1x4xf32>
    %150 = vector.shape_cast %149 : vector<1x4xf32> to vector<4xf32>
    %151 = vector.extract_strided_slice %134 {offsets = [2, 0, 0], sizes = [8, 16, 4], strides = [1, 1, 1]} : vector<10x16x4xf32> to vector<8x16x4xf32>
    %152 = vector.shape_cast %150 : vector<4xf32> to vector<1x1x4xf32>
    %153 = vector.broadcast %152 : vector<1x1x4xf32> to vector<8x16x4xf32>
    %154 = arith.mulf %153, %151 : vector<8x16x4xf32>
    %155 = arith.addf %148, %154 : vector<8x16x4xf32>
    %c8_50 = arith.constant 8 : index
    %c9_51 = arith.constant 9 : index
    %c0_52 = arith.constant 0 : index
    %156 = vector.load %arg8[%c8_50, %c9_51, %c0_52] : memref<18x25x4xf32, #tpu.memory_space<vmem>>, vector<10x16x4xf32>
    %157 = vector.extract_strided_slice %10 {offsets = [2, 0], sizes = [1, 4], strides = [1, 1]} : vector<9x4xf32> to vector<1x4xf32>
    %158 = vector.shape_cast %157 : vector<1x4xf32> to vector<4xf32>
    %159 = vector.extract_strided_slice %156 {offsets = [0, 0, 0], sizes = [8, 16, 4], strides = [1, 1, 1]} : vector<10x16x4xf32> to vector<8x16x4xf32>
    %160 = vector.shape_cast %158 : vector<4xf32> to vector<1x1x4xf32>
    %161 = vector.broadcast %160 : vector<1x1x4xf32> to vector<8x16x4xf32>
    %162 = arith.mulf %161, %159 : vector<8x16x4xf32>
    %163 = arith.addf %155, %162 : vector<8x16x4xf32>
    %164 = vector.extract_strided_slice %10 {offsets = [5, 0], sizes = [1, 4], strides = [1, 1]} : vector<9x4xf32> to vector<1x4xf32>
    %165 = vector.shape_cast %164 : vector<1x4xf32> to vector<4xf32>
    %166 = vector.extract_strided_slice %156 {offsets = [1, 0, 0], sizes = [8, 16, 4], strides = [1, 1, 1]} : vector<10x16x4xf32> to vector<8x16x4xf32>
    %167 = vector.shape_cast %165 : vector<4xf32> to vector<1x1x4xf32>
    %168 = vector.broadcast %167 : vector<1x1x4xf32> to vector<8x16x4xf32>
    %169 = arith.mulf %168, %166 : vector<8x16x4xf32>
    %170 = arith.addf %163, %169 : vector<8x16x4xf32>
    %171 = vector.extract_strided_slice %10 {offsets = [8, 0], sizes = [1, 4], strides = [1, 1]} : vector<9x4xf32> to vector<1x4xf32>
    %172 = vector.shape_cast %171 : vector<1x4xf32> to vector<4xf32>
    %173 = vector.extract_strided_slice %156 {offsets = [2, 0, 0], sizes = [8, 16, 4], strides = [1, 1, 1]} : vector<10x16x4xf32> to vector<8x16x4xf32>
    %174 = vector.shape_cast %172 : vector<4xf32> to vector<1x1x4xf32>
    %175 = vector.broadcast %174 : vector<1x1x4xf32> to vector<8x16x4xf32>
    %176 = arith.mulf %175, %173 : vector<8x16x4xf32>
    %177 = arith.addf %170, %176 : vector<8x16x4xf32>
    %178 = vector.shape_cast %12 : vector<4xf32> to vector<1x1x4xf32>
    %179 = vector.broadcast %178 : vector<1x1x4xf32> to vector<8x16x4xf32>
    %180 = arith.addf %177, %179 : vector<8x16x4xf32>
    %cst_53 = arith.constant 5.000000e-01 : f32
    %181 = vector.broadcast %cst_53 : f32 to vector<8x16x4xf32>
    %182 = arith.mulf %181, %180 : vector<8x16x4xf32>
    %cst_54 = arith.constant 4.471500e-02 : f32
    %183 = vector.broadcast %cst_54 : f32 to vector<8x16x4xf32>
    %184 = arith.mulf %183, %180 : vector<8x16x4xf32>
    %185 = arith.mulf %184, %180 : vector<8x16x4xf32>
    %186 = arith.mulf %185, %180 : vector<8x16x4xf32>
    %187 = arith.addf %180, %186 : vector<8x16x4xf32>
    %cst_55 = arith.constant 0.797884583 : f32
    %188 = vector.broadcast %cst_55 : f32 to vector<8x16x4xf32>
    %189 = arith.mulf %188, %187 : vector<8x16x4xf32>
    %190 = math.tanh %189 : vector<8x16x4xf32>
    %cst_56 = arith.constant 1.000000e+00 : f32
    %191 = vector.broadcast %cst_56 : f32 to vector<8x16x4xf32>
    %192 = arith.addf %191, %190 : vector<8x16x4xf32>
    %193 = arith.mulf %182, %192 : vector<8x16x4xf32>
    %194 = vector.shape_cast %14 : vector<4xf32> to vector<1x1x4xf32>
    %195 = vector.broadcast %194 : vector<1x1x4xf32> to vector<8x16x4xf32>
    %196 = arith.mulf %193, %195 : vector<8x16x4xf32>
    %197 = vector.shape_cast %16 : vector<4xf32> to vector<1x1x4xf32>
    %198 = vector.broadcast %197 : vector<1x1x4xf32> to vector<8x16x4xf32>
    %199 = arith.addf %196, %198 : vector<8x16x4xf32>
    %c9_57 = arith.constant 9 : index
    %c8_58 = arith.constant 8 : index
    %c0_59 = arith.constant 0 : index
    %200 = vector.load %arg8[%c9_57, %c8_58, %c0_59] : memref<18x25x4xf32, #tpu.memory_space<vmem>>, vector<8x16x4xf32>
    %201 = arith.addf %199, %200 : vector<8x16x4xf32>
    %c0_60 = arith.constant 0 : index
    %c8_61 = arith.constant 8 : index
    %c0_62 = arith.constant 0 : index
    %c0_63 = arith.constant 0 : index
    %202 = vector.load %arg7[%c0_60, %c8_61, %c0_62, %c0_63] : memref<1x16x16x4xf32, #tpu.memory_space<vmem>>, vector<1x8x16x4xf32>
    %203 = vector.shape_cast %202 : vector<1x8x16x4xf32> to vector<8x16x4xf32>
    %204 = vector.shape_cast %201 : vector<8x16x4xf32> to vector<1x8x16x4xf32>
    tpu.vector_store %arg7[%c0_60, %c8_61, %c0_62, %c0_63], %204 {strides = array<i32>} : memref<1x16x16x4xf32, #tpu.memory_space<vmem>>, vector<1x8x16x4xf32>,
    return
  }
  func.func @transform_0(%arg0: i32, %arg1: i32) -> (i32, i32) {
    %c0_i32 = arith.constant 0 : i32
    %c0_i32_0 = arith.constant 0 : i32
    return %c0_i32, %arg0 : i32, i32
  }
  func.func @transform_1(%arg0: i32, %arg1: i32) -> (i32, i32) {
    %c0_i32 = arith.constant 0 : i32
    %c0_i32_0 = arith.constant 0 : i32
    return %c0_i32, %arg0 : i32, i32
  }
  func.func @transform_2(%arg0: i32, %arg1: i32) -> (i32, i32) {
    %c0_i32 = arith.constant 0 : i32
    %c0_i32_0 = arith.constant 0 : i32
    return %c0_i32, %arg0 : i32, i32
  }
  func.func @transform_3(%arg0: i32, %arg1: i32) -> (i32, i32) {
    %c0_i32 = arith.constant 0 : i32
    %c0_i32_0 = arith.constant 0 : i32
    return %c0_i32, %arg0 : i32, i32
  }
  func.func @transform_4(%arg0: i32, %arg1: i32) -> (i32, i32, i32, i32) {
    %c0_i32 = arith.constant 0 : i32
    %c0_i32_0 = arith.constant 0 : i32
    %c0_i32_1 = arith.constant 0 : i32
    return %arg1, %c0_i32, %c0_i32_0, %arg0 : i32, i32, i32, i32
  }
  func.func @transform_5(%arg0: i32, %arg1: i32) -> (i32, i32, i32, i32) {
    %c0_i32 = arith.constant 0 : i32
    %c0_i32_0 = arith.constant 0 : i32
    %c0_i32_1 = arith.constant 0 : i32
    return %arg1, %c0_i32, %c0_i32_0, %arg0 : i32, i32, i32, i32
  }
}

</mosaic_0001>

<bundles_post_ra>
// kernel: residual_convmixer_block.1
= control target key start
LH: loop header
LB: loop body
LE: loop exit
PB: predicated region body
PF: predicated region fallthrough
CT: control target
= control target key end

     0   :  { %s1993_s18 = smov 0   ;;  %s1995_s19 = smov 0   ;;  %s3307_s0 = inlined_call_operand.vmem [shape: f32[9,4], index: 0, kind: input, shape index: {}]   ;;  %s3308_s1 = inlined_call_operand.vmem [shape: f32[1,4], index: 1, kind: input, shape index: {}]   ;;  %s3309_s2 = inlined_call_operand.vmem [shape: f32[1,4], index: 2, kind: input, shape index: {}]   ;;  %s3310_s3 = inlined_call_operand.vmem [shape: f32[1,4], index: 3, kind: input, shape index: {}]   ;;  %s3311_s4 = inlined_call_operand.vmem [shape: f32[2,16,16,4], index: 4, kind: input, shape index: {}]   ;;  %s3312_s5 = inlined_call_operand.vmem [shape: f32[2,16,16,4], index: 5, kind: output, shape index: {}]  }
   0x1   :  { %s1997_s20 = smov 0  }
   0x2 LB: > { %s24_s21 = sadd.s32 1, %s1956_s19  ;;  %p1804_p0 = scmp.ge.s32.totalorder %s1960_s20, 1  ;;  %s1960_s20 = sphi %s1997_s20, %s15_s20   ;;  %s1956_s19 = sphi %s1995_s19, %s3484_s19   ;;  %s1952_s18 = sphi %s1993_s18, %s3483_s18  }
   0x3   : > { %p25_p1 = scmp.ge.s32.totalorder %s24_s21, 2  ;;  %p239_p2 = scmp.lt.s32.totalorder %s1960_s20, 3 }
   0x5   : > { %s3486_s21 = smov (%p25_p1, %s24_s21), 0  ;;  %p240_p3 = pnand %p1804_p0, %p239_p2 }
   0x7   : > { %243 = sbr.rel (%p240_p3) target bundleno = 316 (0x13c), region = 40 }
   0xe   : > { %vm315_vm0 = vcmask 31744   ;;  %v448_v0 = vlaneseq  ;;  %vm319_vm1 = vcmask 24576   ;;  %p299_p4 = scmp.lt.s32.totalorder %s1952_s18, 1  ;;  %v1962_v1 = vmov 0.0   ;;  %v423_v3 = vld [vmem:[%s3307_s0] sm:$0xff] }
   0xf   : > { %316 = vst.msk [vmem:[#allocation2] sm:$0xff] %vm315_vm0, %v1962_v1  ;;  %317 = vst.msk [vmem:[#allocation2 + $0x8] sm:$0xff] %vm315_vm0, %v1962_v1 }
  0x10   : > { %318 = vst.msk [vmem:[#allocation2 + $0x10] sm:$0xff] %vm315_vm0, %v1962_v1  ;;  %322 = vst.msk [vmem:[#allocation2 + $0x220] sm:$0xff] %vm315_vm0, %v1962_v1  ;;  %v2054_v2 = vshrl.u32 %v448_v0, 7  ;;  %s3488_s18 = smov (!%p299_p4, %s1952_s18), 1 }
  0x11   : > { %323 = vst.msk [vmem:[#allocation2 + $0x228] sm:$0xff] %vm315_vm0, %v1962_v1  ;;  %324 = vst.msk [vmem:[#allocation2 + $0x230] sm:$0xff] %vm315_vm0, %v1962_v1  ;;  %s1831_s22 = sshll.u32 %s3488_s18, 8 }
  0x12   : > { %327 = vst.msk [vmem:[#allocation2 + $0x20] sm:$0xff] %vm315_vm0, %v1962_v1  ;;  %328 = vst.msk [vmem:[#allocation2 + $0x40] sm:$0xff] %vm315_vm0, %v1962_v1  ;;  %v450_v4 = vsub.s32 0, %v2054_v2  ;;  %s2071_s27 = scalar_lea.vmem %s3311_s4, %s1831_s22  ;;  %v578_v5 = vsub.s32 1, %v2054_v2  ;;  %v486_v9 = vsub.s32 3, %v2054_v2  ;;  %v706_v13 = vsub.s32 2, %v2054_v2  ;;  %s2776_s13 = scalar_lea.vmem %s3312_s5, %s1831_s22 }
  0x13   : > { %329 = vst.msk [vmem:[#allocation2 + $0x60] sm:$0xff] %vm315_vm0, %v1962_v1  ;;  %330 = vst.msk [vmem:[#allocation2 + $0x80] sm:$0xff] %vm315_vm0, %v1962_v1  ;;  %v359_v6 = vld [vmem:[%s2071_s27] sm:$0xff]  ;;  %v360_v7 = vld [vmem:[%s2071_s27 + $0x8] sm:$0xff]  ;;  %v614_v18 = vsub.s32 4, %v2054_v2  ;;  %v522_v19 = vsub.s32 6, %v2054_v2 }
  0x14   : > { %331 = vst.msk [vmem:[#allocation2 + $0xa0] sm:$0xff] %vm315_vm0, %v1962_v1  ;;  %332 = vst.msk [vmem:[#allocation2 + $0xc0] sm:$0xff] %vm315_vm0, %v1962_v1  ;;  %v361_v8 = vld [vmem:[%s2071_s27 + $0x10] sm:$0xff]  ;;  %v362_v10 = vld [vmem:[%s2071_s27 + $0x18] sm:$0xff]  ;;  %v2088_v16 = vrot.slane %v423_v3, %v450_v4  ;;  %v2092_v21 = vrot.slane %v423_v3, %v578_v5  ;;  %v650_v24 = vsub.s32 7, %v2054_v2  ;;  %v742_v25 = vsub.s32 5, %v2054_v2 }
  0x15   : > { %333 = vst.msk [vmem:[#allocation2 + $0xe0] sm:$0xff] %vm315_vm0, %v1962_v1  ;;  %334 = vst.msk [vmem:[#allocation2 + $0x100] sm:$0xff] %vm315_vm0, %v1962_v1  ;;  %v363_v11 = vld [vmem:[%s2071_s27 + $0x20] sm:$0xff]  ;;  %v364_v12 = vld [vmem:[%s2071_s27 + $0x28] sm:$0xff]  ;;  %v2096_v29 = vrot.slane %v423_v3, %v486_v9  ;;  %v2100_v32 = vrot.slane %v423_v3, %v706_v13  ;;  %v2108_v37 = vrot.slane %v423_v3, %v614_v18 }
  0x16   : > { %335 = vst.msk [vmem:[#allocation2 + $0x120] sm:$0xff] %vm315_vm0, %v1962_v1  ;;  %336 = vst.msk [vmem:[#allocation2 + $0x140] sm:$0xff] %vm315_vm0, %v1962_v1  ;;  %v428_v14 = vld [vmem:[#allocation2 + $0x7] sm:$0xff]  ;;  %v365_v30 = vld [vmem:[%s2071_s27 + $0x30] sm:$0xff]  ;;  %v2110_v38 = vrot.slane %v423_v3, %v522_v19  ;;  %v2122_v47 = vrot.slane %v423_v3, %v650_v24  ;;  %v2127_v48 = vrot.slane %v423_v3, %v742_v25 }
  0x17   : > { %337 = vst.msk [vmem:[#allocation2 + $0x160] sm:$0xff] %vm315_vm0, %v1962_v1  ;;  %338 = vst.msk [vmem:[#allocation2 + $0x180] sm:$0xff] %vm315_vm0, %v1962_v1  ;;  %v429_v15 = vld [vmem:[#allocation2 + $0xf] sm:$0xff]  ;;  %v366_v31 = vld [vmem:[%s2071_s27 + $0x38] sm:$0xff]  ;;  %v452_v36 = vmul.f32 %v2088_v16, %v428_v14 }
  0x18   : > { %339 = vst.msk [vmem:[#allocation2 + $0x1a0] sm:$0xff] %vm315_vm0, %v1962_v1  ;;  %340 = vst.msk [vmem:[#allocation2 + $0x1c0] sm:$0xff] %vm315_vm0, %v1962_v1  ;;  %v556_v17 = vld [vmem:[#allocation2 + $0x8] sm:$0xff]  ;;  %v557_v20 = vld [vmem:[#allocation2 + $0x10] sm:$0xff]  ;;  %v453_v42 = vmul.f32 %v2088_v16, %v429_v15 }
  0x19   : > { %341 = vst.msk [vmem:[#allocation2 + $0x1e0] sm:$0xff] %vm315_vm0, %v1962_v1  ;;  %342 = vst.msk [vmem:[#allocation2 + $0x200] sm:$0xff] %vm315_vm0, %v1962_v1  ;;  %v684_v22 = vld [vmem:[#allocation2 + $0x9] sm:$0xff]  ;;  %v367_v33 = vld [vmem:[%s2071_s27 + $0x40] sm:$0xff]  ;;  %v2120_v43 = vmul.f32 %v2092_v21, %v556_v17  ;;  %v2130_v49 = vmul.f32 %v2092_v21, %v557_v20 }
  0x1a   : > { %320 = vst.msk [vmem:[#allocation2 + $0x18] sm:$0x1] %vm319_vm1, %v1962_v1  ;;  %325 = vst.msk [vmem:[#allocation2 + $0x238] sm:$0x1] %vm319_vm1, %v1962_v1  ;;  %v1089_v23 = vld [vmem:[#allocation2 + $0x227] sm:$0xff]  ;;  %v1090_v26 = vld [vmem:[#allocation2 + $0x22f] sm:$0xff]  ;;  %v2137_v55 = vmul.f32 %v2100_v32, %v684_v22 }
  0x1b   : > { %343 = vst.msk [vmem:[#allocation2 + $0x38] sm:$0x1] %vm319_vm1, %v1962_v1  ;;  %344 = vst.msk [vmem:[#allocation2 + $0x58] sm:$0x1] %vm319_vm1, %v1962_v1  ;;  %v1205_v27 = vld [vmem:[#allocation2 + $0x228] sm:$0xff]  ;;  %v1206_v28 = vld [vmem:[#allocation2 + $0x230] sm:$0xff]  ;;  %v2134_v54 = vmul.f32 %v1089_v23, %v2110_v38  ;;  %v2141_v57 = vmul.f32 %v1090_v26, %v2110_v38 }
  0x1c   : > { %345 = vst.msk [vmem:[#allocation2 + $0x78] sm:$0x1] %vm319_vm1, %v1962_v1  ;;  %346 = vst.msk [vmem:[#allocation2 + $0x98] sm:$0x1] %vm319_vm1, %v1962_v1  ;;  %v368_v34 = vld [vmem:[%s2071_s27 + $0x48] sm:$0xff]  ;;  %v369_v35 = vld [vmem:[%s2071_s27 + $0x50] sm:$0xff]  ;;  %v2144_v58 = vmul.f32 %v1205_v27, %v2122_v47  ;;  %v2147_v59 = vmul.f32 %v1206_v28, %v2122_v47 }
  0x1d   : > { %347 = vst.msk [vmem:[#allocation2 + $0xb8] sm:$0x1] %vm319_vm1, %v1962_v1  ;;  %348 = vst.msk [vmem:[#allocation2 + $0xd8] sm:$0x1] %vm319_vm1, %v1962_v1  ;;  %v370_v39 = vld [vmem:[%s2071_s27 + $0x58] sm:$0xff]  ;;  %v371_v40 = vld [vmem:[%s2071_s27 + $0x60] sm:$0xff] }
  0x1e   : > { %349 = vst.msk [vmem:[#allocation2 + $0xf8] sm:$0x1] %vm319_vm1, %v1962_v1  ;;  %350 = vst.msk [vmem:[#allocation2 + $0x118] sm:$0x1] %vm319_vm1, %v1962_v1  ;;  %v372_v41 = vld [vmem:[%s2071_s27 + $0x68] sm:$0xff]  ;;  %v375_v9 = vld [vmem:[%s2071_s27 + $0x80] sm:$0xff] }
  0x1f   : > { %351 = vst.msk [vmem:[#allocation2 + $0x138] sm:$0x1] %vm319_vm1, %v1962_v1  ;;  %352 = vst.msk [vmem:[#allocation2 + $0x158] sm:$0x1] %vm319_vm1, %v1962_v1 }
  0x20   : > { %353 = vst.msk [vmem:[#allocation2 + $0x178] sm:$0x1] %vm319_vm1, %v1962_v1  ;;  %354 = vst.msk [vmem:[#allocation2 + $0x198] sm:$0x1] %vm319_vm1, %v1962_v1 }
  0x21   : > { %355 = vst.msk [vmem:[#allocation2 + $0x1b8] sm:$0x1] %vm319_vm1, %v1962_v1  ;;  %356 = vst.msk [vmem:[#allocation2 + $0x1d8] sm:$0x1] %vm319_vm1, %v1962_v1  ;;  %v685_v44 = vld [vmem:[#allocation2 + $0x11] sm:$0xff] }
  0x22   : > { %357 = vst.msk [vmem:[#allocation2 + $0x1f8] sm:$0x1] %vm319_vm1, %v1962_v1  ;;  %358 = vst.msk [vmem:[#allocation2 + $0x218] sm:$0x1] %vm319_vm1, %v1962_v1  ;;  %v2152_v2 = vmul.f32 %v2100_v32, %v685_v44 }
  0x23   : > { %391 = vst.msk [vmem:[#allocation2 + $0x28] sm:$0xff] %vm315_vm0, %v359_v6  ;;  %392 = vst.msk [vmem:[#allocation2 + $0x30] sm:$0xff] %vm315_vm0, %v360_v7  ;;  %v373_v7 = vld [vmem:[%s2071_s27 + $0x70] sm:$0xff] }
  0x24   : > { %393 = vst.msk [vmem:[#allocation2 + $0x48] sm:$0xff] %vm315_vm0, %v361_v8  ;;  %394 = vst.msk [vmem:[#allocation2 + $0x50] sm:$0xff] %vm315_vm0, %v362_v10  ;;  %v374_v8 = vld [vmem:[%s2071_s27 + $0x78] sm:$0xff] }
  0x25   : > { %395 = vst.msk [vmem:[#allocation2 + $0x68] sm:$0xff] %vm315_vm0, %v363_v11  ;;  %396 = vst.msk [vmem:[#allocation2 + $0x70] sm:$0xff] %vm315_vm0, %v364_v12 }
  0x26   : > { %3317 = vst [vmem:[#allocation3_spill] sm:$0xff] %v2092_v21  ;;  %397 = vst.msk [vmem:[#allocation2 + $0x88] sm:$0xff] %vm315_vm0, %v365_v30 }
  0x27   : > { %398 = vst.msk [vmem:[#allocation2 + $0x90] sm:$0xff] %vm315_vm0, %v366_v31  ;;  %3318 = vst [vmem:[#allocation4_spill] sm:$0xff] %v2108_v37 }
  0x28   : > { %399 = vst.msk [vmem:[#allocation2 + $0xa8] sm:$0xff] %vm315_vm0, %v367_v33  ;;  %400 = vst.msk [vmem:[#allocation2 + $0xb0] sm:$0xff] %vm315_vm0, %v368_v34 }
  0x29   : > { %401 = vst.msk [vmem:[#allocation2 + $0xc8] sm:$0xff] %vm315_vm0, %v369_v35  ;;  %402 = vst.msk [vmem:[#allocation2 + $0xd0] sm:$0xff] %vm315_vm0, %v370_v39 }
  0x2a   : > { %v430_v45 = vld [vmem:[#allocation2 + $0x27] sm:$0xff]  ;;  %v431_v46 = vld [vmem:[#allocation2 + $0x2f] sm:$0xff]  ;;  %403 = vst.msk [vmem:[#allocation2 + $0xe8] sm:$0xff] %vm315_vm0, %v371_v40  ;;  %404 = vst.msk [vmem:[#allocation2 + $0xf0] sm:$0xff] %vm315_vm0, %v372_v41 }
  0x2b   : > { %v488_v50 = vmul.f32 %v2096_v29, %v430_v45  ;;  %v558_v51 = vld [vmem:[#allocation2 + $0x28] sm:$0xff]  ;;  %v559_v52 = vld [vmem:[#allocation2 + $0x30] sm:$0xff]  ;;  %v489_v56 = vmul.f32 %v2096_v29, %v431_v46  ;;  %3319 = vst [vmem:[#allocation5_spill] sm:$0xff] %v2144_v58  ;;  %3320 = vst [vmem:[#allocation6_spill] sm:$0xff] %v2147_v59  ;;  %v454_v61 = vmul.f32 %v2088_v16, %v430_v45 }
  0x2c   : > { %v432_v53 = vld [vmem:[#allocation2 + $0x47] sm:$0xff]  ;;  %v433_v60 = vld [vmem:[#allocation2 + $0x4f] sm:$0xff]  ;;  %v2155_v3 = vmul.f32 %v2092_v21, %v558_v51  ;;  %v2158_v4 = vmul.f32 %v2108_v37, %v558_v51  ;;  %v455_v5 = vmul.f32 %v2088_v16, %v431_v46  ;;  %v2162_v6 = vmul.f32 %v2092_v21, %v559_v52  ;;  %405 = vst.msk [vmem:[#allocation2 + $0x108] sm:$0xff] %vm315_vm0, %v373_v7 }
  0x2d   : > { %v504_v62 = vadd.f32 %v488_v50, %v452_v36  ;;  %v490_v63 = vmul.f32 %v2096_v29, %v432_v53  ;;  %v560_v0 = vld [vmem:[#allocation2 + $0x48] sm:$0xff]  ;;  %v2168_v10 = vmul.f32 %v2108_v37, %v559_v52  ;;  %v456_v11 = vmul.f32 %v2088_v16, %v432_v53  ;;  %v561_v14 = vld [vmem:[#allocation2 + $0x50] sm:$0xff]  ;;  %406 = vst.msk [vmem:[#allocation2 + $0x110] sm:$0xff] %vm315_vm0, %v374_v8 }
  0x2e   : > { %v434_v1 = vld [vmem:[#allocation2 + $0x67] sm:$0xff]  ;;  %v524_v12 = vmul.f32 %v2110_v38, %v432_v53  ;;  %v491_v13 = vmul.f32 %v2096_v29, %v433_v60  ;;  %407 = vst.msk [vmem:[#allocation2 + $0x128] sm:$0xff] %vm315_vm0, %v375_v9  ;;  %v505_v15 = vadd.f32 %v489_v56, %v453_v42  ;;  %v2177_v17 = vmul.f32 %v2092_v21, %v560_v0  ;;  %v435_v20 = vld [vmem:[#allocation2 + $0x6f] sm:$0xff] }
  0x2f   : > { %v2180_v18 = vmul.f32 %v2108_v37, %v560_v0  ;;  %v2183_v19 = vmul.f32 %v2122_v47, %v560_v0  ;;  %v506_v22 = vadd.f32 %v490_v63, %v454_v61  ;;  %v457_v24 = vmul.f32 %v2088_v16, %v433_v60  ;;  %v562_v26 = vld [vmem:[#allocation2 + $0x68] sm:$0xff]  ;;  %v563_v40 = vld [vmem:[#allocation2 + $0x70] sm:$0xff]  ;;  %v379_v63 = vld [vmem:[%s2071_s27 + $0xa0] sm:$0xff] }
  0x30   : > { %v2185_v23 = vadd.f32 %v524_v12, %v504_v62  ;;  %v492_v25 = vmul.f32 %v2096_v29, %v434_v1  ;;  %v525_v27 = vmul.f32 %v2110_v38, %v433_v60  ;;  %v2191_v28 = vmul.f32 %v2092_v21, %v561_v14  ;;  %v436_v33 = vld [vmem:[#allocation2 + $0x87] sm:$0xff]  ;;  %v437_v50 = vld [vmem:[#allocation2 + $0x8f] sm:$0xff]  ;;  %v378_v62 = vld [vmem:[%s2071_s27 + $0x98] sm:$0xff]  ;;  %411 = vst.msk [vmem:[#allocation2 + $0x168] sm:$0xff] %vm315_vm0, %v379_v63 }
  0x31   : > { %v2194_v30 = vmul.f32 %v2108_v37, %v561_v14  ;;  %v2197_v31 = vmul.f32 %v2122_v47, %v561_v14  ;;  %v507_v34 = vadd.f32 %v491_v13, %v455_v5  ;;  %v458_v35 = vmul.f32 %v2088_v16, %v434_v1  ;;  %v564_v41 = vld [vmem:[#allocation2 + $0x88] sm:$0xff]  ;;  %v377_v52 = vld [vmem:[%s2071_s27 + $0x90] sm:$0xff]  ;;  %410 = vst.msk [vmem:[#allocation2 + $0x150] sm:$0xff] %vm315_vm0, %v378_v62  ;;  %v382_v62 = vld [vmem:[%s2071_s27 + $0xb8] sm:$0xff] }
  0x32   : > { %v526_v36 = vmul.f32 %v2110_v38, %v434_v1  ;;  %v493_v39 = vmul.f32 %v2096_v29, %v435_v20  ;;  %v2202_v42 = vadd.f32 %v525_v27, %v505_v15  ;;  %v2205_v44 = vmul.f32 %v2092_v21, %v562_v26  ;;  %v376_v51 = vld [vmem:[%s2071_s27 + $0x88] sm:$0xff]  ;;  %409 = vst.msk [vmem:[#allocation2 + $0x148] sm:$0xff] %vm315_vm0, %v377_v52  ;;  %v565_v15 = vld [vmem:[#allocation2 + $0x90] sm:$0xff]  ;;  %v383_v63 = vld [vmem:[%s2071_s27 + $0xc0] sm:$0xff] }
  0x33   : > { %v2208_v45 = vmul.f32 %v2108_v37, %v562_v26  ;;  %v2211_v46 = vmul.f32 %v2122_v47, %v562_v26  ;;  %v508_v53 = vadd.f32 %v492_v25, %v456_v11  ;;  %v459_v60 = vmul.f32 %v2088_v16, %v435_v20  ;;  %408 = vst.msk [vmem:[#allocation2 + $0x130] sm:$0xff] %vm315_vm0, %v376_v51  ;;  %v380_v0 = vld [vmem:[%s2071_s27 + $0xa8] sm:$0xff]  ;;  %v567_v52 = vld [vmem:[#allocation2 + $0xb0] sm:$0xff] }
  0x34   : > { %v2215_v56 = vadd.f32 %v526_v36, %v506_v22  ;;  %v494_v61 = vmul.f32 %v2096_v29, %v436_v33  ;;  %v527_v1 = vmul.f32 %v2110_v38, %v435_v20  ;;  %v2226_v5 = vmul.f32 %v2092_v21, %v563_v40  ;;  %v438_v9 = vld [vmem:[#allocation2 + $0xa7] sm:$0xff]  ;;  %412 = vst.msk [vmem:[#allocation2 + $0x170] sm:$0xff] %vm315_vm0, %v380_v0  ;;  %v439_v27 = vld [vmem:[#allocation2 + $0xaf] sm:$0xff] }
  0x35   : > { %v2229_v7 = vmul.f32 %v2108_v37, %v563_v40  ;;  %v2232_v8 = vmul.f32 %v2122_v47, %v563_v40  ;;  %v509_v11 = vadd.f32 %v493_v39, %v457_v24  ;;  %v460_v12 = vmul.f32 %v2088_v16, %v436_v33  ;;  %v566_v20 = vld [vmem:[#allocation2 + $0xa8] sm:$0xff]  ;;  %v381_v36 = vld [vmem:[%s2071_s27 + $0xb0] sm:$0xff]  ;;  %414 = vst.msk [vmem:[#allocation2 + $0x190] sm:$0xff] %vm315_vm0, %v382_v62 }
  0x36   : > { %3321 = vst [vmem:[#allocation7_spill] sm:$0xff] %v2226_v5  ;;  %v528_v13 = vmul.f32 %v2110_v38, %v436_v33  ;;  %v495_v14 = vmul.f32 %v2096_v29, %v437_v50  ;;  %v2240_v22 = vadd.f32 %v527_v1, %v507_v34  ;;  %v2243_v25 = vmul.f32 %v2092_v21, %v564_v41  ;;  %v440_v33 = vld [vmem:[#allocation2 + $0xc7] sm:$0xff]  ;;  %v389_v62 = vld [vmem:[%s2071_s27 + $0xf0] sm:$0xff] }
  0x37   : > { %v2246_v26 = vmul.f32 %v2108_v37, %v564_v41  ;;  %v2249_v24 = vmul.f32 %v2122_v47, %v564_v41  ;;  %v510_v39 = vadd.f32 %v494_v61, %v458_v35  ;;  %v461_v34 = vmul.f32 %v2088_v16, %v437_v50  ;;  %413 = vst.msk [vmem:[#allocation2 + $0x188] sm:$0xff] %vm315_vm0, %v381_v36  ;;  %v384_v41 = vld [vmem:[%s2071_s27 + $0xc8] sm:$0xff]  ;;  %v385_v61 = vld [vmem:[%s2071_s27 + $0xd0] sm:$0xff] }
  0x38   : > { %3322 = vst [vmem:[#allocation8_spill] sm:$0xff] %v2243_v25  ;;  %v2252_v40 = vadd.f32 %v528_v13, %v508_v53  ;;  %v496_v51 = vmul.f32 %v2096_v29, %v438_v9  ;;  %v529_v0 = vmul.f32 %v2110_v38, %v437_v50  ;;  %v2262_v1 = vmul.f32 %v2092_v21, %v565_v15  ;;  %v386_v50 = vld [vmem:[%s2071_s27 + $0xd8] sm:$0xff]  ;;  %v387_v13 = vld [vmem:[%s2071_s27 + $0xe0] sm:$0xff]  ;;  %v570_v5 = vld [vmem:[#allocation2 + $0xe8] sm:$0xff] }
  0x39   : > { %v2265_v35 = vmul.f32 %v2108_v37, %v565_v15  ;;  %v2268_v53 = vmul.f32 %v2122_v47, %v565_v15  ;;  %415 = vst.msk [vmem:[#allocation2 + $0x1a8] sm:$0xff] %vm315_vm0, %v383_v63  ;;  %416 = vst.msk [vmem:[#allocation2 + $0x1b0] sm:$0xff] %vm315_vm0, %v384_v41  ;;  %v511_v36 = vadd.f32 %v495_v14, %v459_v60  ;;  %v388_v15 = vld [vmem:[%s2071_s27 + $0xe8] sm:$0xff]  ;;  %v390_v63 = vld [vmem:[%s2071_s27 + $0xf8] sm:$0xff] }
  0x3a   : > { %3323 = vst [vmem:[#allocation9_spill] sm:$0xff] %v2262_v1  ;;  %v462_v59 = vmul.f32 %v2088_v16, %v438_v9  ;;  %v530_v58 = vmul.f32 %v2110_v38, %v438_v9  ;;  %v497_v1 = vmul.f32 %v2096_v29, %v439_v27  ;;  %417 = vst.msk [vmem:[#allocation2 + $0x1c8] sm:$0xff] %vm315_vm0, %v385_v61  ;;  %v441_v14 = vld [vmem:[#allocation2 + $0xcf] sm:$0xff] }
  0x3b   : > { %3324 = vst [vmem:[#allocation10_spill] sm:$0xff] %v2265_v35  ;;  %418 = vst.msk [vmem:[#allocation2 + $0x1d0] sm:$0xff] %vm315_vm0, %v386_v50  ;;  %v2285_v41 = vadd.f32 %v529_v0, %v509_v11  ;;  %v2288_v25 = vmul.f32 %v2092_v21, %v566_v20  ;;  %v2291_v60 = vmul.f32 %v2108_v37, %v566_v20 }
  0x3c   : > { %419 = vst.msk [vmem:[#allocation2 + $0x1e8] sm:$0xff] %vm315_vm0, %v387_v13  ;;  %v2294_v9 = vmul.f32 %v2122_v47, %v566_v20  ;;  %420 = vst.msk [vmem:[#allocation2 + $0x1f0] sm:$0xff] %vm315_vm0, %v388_v15  ;;  %v512_v61 = vadd.f32 %v496_v51, %v460_v12  ;;  %v2299_v50 = vadd.f32 %v530_v58, %v510_v39  ;;  %v568_v13 = vld [vmem:[#allocation2 + $0xc8] sm:$0xff] }
  0x3d   : > { %3325 = vst [vmem:[#allocation11_spill] sm:$0xff] %v2288_v25  ;;  %3326 = vst [vmem:[#allocation12_spill] sm:$0xff] %v2291_v60  ;;  %v463_v11 = vmul.f32 %v2088_v16, %v439_v27  ;;  %v498_v0 = vmul.f32 %v2096_v29, %v440_v33  ;;  %v531_v25 = vmul.f32 %v2110_v38, %v439_v27 }
  0x3e   : > { %3327 = vst [vmem:[#allocation13_spill] sm:$0xff] %v2294_v9  ;;  %421 = vst.msk [vmem:[#allocation2 + $0x208] sm:$0xff] %vm315_vm0, %v389_v62  ;;  %v2305_v20 = vmul.f32 %v2092_v21, %v567_v52  ;;  %v2308_v60 = vmul.f32 %v2108_v37, %v567_v52  ;;  %v2311_v15 = vmul.f32 %v2122_v47, %v567_v52  ;;  %v442_v62 = vld [vmem:[#allocation2 + $0xe7] sm:$0xff] }
  0x3f   : > { %422 = vst.msk [vmem:[#allocation2 + $0x210] sm:$0xff] %vm315_vm0, %v390_v63  ;;  %v513_v12 = vadd.f32 %v497_v1, %v461_v34  ;;  %v464_v58 = vmul.f32 %v2088_v16, %v440_v33  ;;  %v532_v39 = vmul.f32 %v2110_v38, %v440_v33  ;;  %v499_v51 = vmul.f32 %v2096_v29, %v441_v14  ;;  %v569_v63 = vld [vmem:[#allocation2 + $0xd0] sm:$0xff] }
  0x40   : > { %3328 = vst [vmem:[#allocation14_spill] sm:$0xff] %v2305_v20  ;;  %3329 = vst [vmem:[#allocation15_spill] sm:$0xff] %v2308_v60  ;;  %v2316_v35 = vadd.f32 %v531_v25, %v511_v36  ;;  %v2319_v27 = vmul.f32 %v2092_v21, %v568_v13  ;;  %v2322_v20 = vmul.f32 %v2108_v37, %v568_v13  ;;  %v443_v60 = vld [vmem:[#allocation2 + $0xef] sm:$0xff] }
  0x41   : > { %3330 = vst [vmem:[#allocation16_spill] sm:$0xff] %v2311_v15  ;;  %v2325_v52 = vmul.f32 %v2122_v47, %v568_v13  ;;  %v514_v34 = vadd.f32 %v498_v0, %v462_v59  ;;  %v2327_v1 = vadd.f32 %v532_v39, %v512_v61  ;;  %v465_v33 = vmul.f32 %v2088_v16, %v441_v14 }
  0x42   : > { %3331 = vst [vmem:[#allocation17_spill] sm:$0xff] %v2316_v35  ;;  %3332 = vst [vmem:[#allocation18_spill] sm:$0xff] %v2319_v27  ;;  %v500_v15 = vmul.f32 %v2096_v29, %v442_v62  ;;  %v533_v25 = vmul.f32 %v2110_v38, %v441_v14  ;;  %v2333_v36 = vmul.f32 %v2092_v21, %v569_v63 }
  0x43   : > { %3333 = vst [vmem:[#allocation19_spill] sm:$0xff] %v2322_v20  ;;  %3334 = vst [vmem:[#allocation20_spill] sm:$0xff] %v2325_v52  ;;  %v2336_v27 = vmul.f32 %v2108_v37, %v569_v63  ;;  %v2339_v13 = vmul.f32 %v2122_v47, %v569_v63  ;;  %v444_v20 = vld [vmem:[#allocation2 + $0x107] sm:$0xff]  ;;  %v515_v59 = vadd.f32 %v499_v51, %v463_v11  ;;  %v571_v52 = vld [vmem:[#allocation2 + $0xf0] sm:$0xff] }
  0x44   : > { %3335 = vst [vmem:[#allocation21_spill] sm:$0xff] %v2327_v1  ;;  %3336 = vst [vmem:[#allocation22_spill] sm:$0xff] %v2333_v36  ;;  %v466_v61 = vmul.f32 %v2088_v16, %v442_v62  ;;  %v534_v0 = vmul.f32 %v2110_v38, %v442_v62  ;;  %v501_v39 = vmul.f32 %v2096_v29, %v443_v60  ;;  %v445_v11 = vld [vmem:[#allocation2 + $0x10f] sm:$0xff] }
  0x45   : > { %3337 = vst [vmem:[#allocation23_spill] sm:$0xff] %v2336_v27  ;;  %3338 = vst [vmem:[#allocation24_spill] sm:$0xff] %v2339_v13  ;;  %v2344_v1 = vadd.f32 %v533_v25, %v513_v12  ;;  %v2347_v14 = vmul.f32 %v2092_v21, %v570_v5  ;;  %v2350_v36 = vmul.f32 %v2108_v37, %v570_v5  ;;  %v572_v27 = vld [vmem:[#allocation2 + $0x108] sm:$0xff] }
  0x46   : > { %v2353_v63 = vmul.f32 %v2122_v47, %v570_v5  ;;  %v516_v51 = vadd.f32 %v500_v15, %v464_v58  ;;  %v2355_v13 = vadd.f32 %v534_v0, %v514_v34  ;;  %v467_v62 = vmul.f32 %v2088_v16, %v443_v60  ;;  %v573_v0 = vld [vmem:[#allocation2 + $0x110] sm:$0xff] }
  0x47   : > { %3339 = vst [vmem:[#allocation25_spill] sm:$0xff] %v2344_v1  ;;  %3340 = vst [vmem:[#allocation26_spill] sm:$0xff] %v2347_v14  ;;  %v502_v35 = vmul.f32 %v2096_v29, %v444_v20  ;;  %v535_v12 = vmul.f32 %v2110_v38, %v443_v60  ;;  %v2361_v25 = vmul.f32 %v2092_v21, %v571_v52  ;;  %v574_v1 = vld [vmem:[#allocation2 + $0x128] sm:$0xff] }
  0x48   : > { %3341 = vst [vmem:[#allocation27_spill] sm:$0xff] %v2350_v36  ;;  %3342 = vst [vmem:[#allocation28_spill] sm:$0xff] %v2353_v63  ;;  %v2364_v14 = vmul.f32 %v2108_v37, %v571_v52  ;;  %v2367_v5 = vmul.f32 %v2122_v47, %v571_v52  ;;  %v517_v36 = vadd.f32 %v501_v39, %v465_v33  ;;  %v446_v63 = vld [vmem:[#allocation2 + $0x127] sm:$0xff]  ;;  %v447_v33 = vld [vmem:[#allocation2 + $0x12f] sm:$0xff] }
  0x49   : > { %3343 = vst [vmem:[#allocation29_spill] sm:$0xff] %v2355_v13  ;;  %3344 = vst [vmem:[#allocation30_spill] sm:$0xff] %v2361_v25  ;;  %v536_v15 = vmul.f32 %v2110_v38, %v444_v20  ;;  %v2371_v58 = vmul.f32 %v2108_v37, %v572_v27  ;;  %v503_v34 = vmul.f32 %v2096_v29, %v445_v11 }
  0x4a   : > { %3345 = vst [vmem:[#allocation31_spill] sm:$0xff] %v2364_v14  ;;  %3346 = vst [vmem:[#allocation32_spill] sm:$0xff] %v2367_v5  ;;  %v2374_v60 = vadd.f32 %v535_v12, %v515_v59  ;;  %v2377_v25 = vmul.f32 %v2122_v47, %v572_v27  ;;  %v1091_v14 = vmul.f32 %v2088_v16, %v444_v20 }
  0x4b   : > { %3347 = vst [vmem:[#allocation33_spill] sm:$0xff] %v2371_v58  ;;  %v2381_v52 = vmul.f32 %v2092_v21, %v572_v27  ;;  %v518_v39 = vadd.f32 %v502_v35, %v466_v61  ;;  %v2383_v5 = vadd.f32 %v536_v15, %v516_v51  ;;  %v519_v13 = vadd.f32 %v503_v34, %v467_v62  ;;  %v1075_v27 = vld [vmem:[#allocation2 + $0x147] sm:$0xff] }
  0x4c   : > { %3348 = vst [vmem:[#allocation34_spill] sm:$0xff] %v2377_v25  ;;  %v537_v58 = vmul.f32 %v2110_v38, %v445_v11  ;;  %v2387_v9 = vmul.f32 %v2108_v37, %v573_v0  ;;  %v2390_v59 = vmul.f32 %v2122_v47, %v573_v0  ;;  %v1092_v12 = vmul.f32 %v2088_v16, %v445_v11 }
  0x4d   : > { %3349 = vst [vmem:[#allocation35_spill] sm:$0xff] %v2381_v52  ;;  %3350 = vst [vmem:[#allocation36_spill] sm:$0xff] %v2383_v5  ;;  %v1123_v20 = vmul.f32 %v2096_v29, %v446_v63  ;;  %v2397_v35 = vmul.f32 %v2092_v21, %v573_v0  ;;  %v1093_v61 = vmul.f32 %v2088_v16, %v446_v63 }
  0x4e   : > { %3351 = vst [vmem:[#allocation37_spill] sm:$0xff] %v2387_v9  ;;  %3352 = vst [vmem:[#allocation38_spill] sm:$0xff] %v2390_v59  ;;  %v2394_v52 = vadd.f32 %v537_v58, %v517_v36  ;;  %v539_v51 = vmul.f32 %v2110_v38, %v447_v33  ;;  %v538_v62 = vmul.f32 %v2110_v38, %v446_v63  ;;  %v1076_v9 = vld [vmem:[#allocation2 + $0x14f] sm:$0xff] }
  0x4f   : > { %3354 = vst [vmem:[#allocation40_spill] sm:$0xff] %v2397_v35  ;;  %v2403_v15 = vmul.f32 %v2122_v47, %v574_v1  ;;  %v1139_v34 = vadd.f32 %v1123_v20, %v1091_v14  ;;  %v1124_v11 = vmul.f32 %v2096_v29, %v447_v33  ;;  %v575_v36 = vld [vmem:[#allocation2 + $0x130] sm:$0xff]  ;;  %v1094_v58 = vmul.f32 %v2088_v16, %v447_v33  ;;  %v1077_v20 = vld [vmem:[#allocation2 + $0x167] sm:$0xff] }
  0x50   : > { %3353 = vst [vmem:[#allocation39_spill] sm:$0xff] %v2394_v52  ;;  %v2406_v59 = vadd.f32 %v539_v51, %v519_v13  ;;  %v1125_v0 = vmul.f32 %v1075_v27, %v2096_v29  ;;  %v1155_v35 = vmul.f32 %v1075_v27, %v2110_v38  ;;  %v2411_v25 = vadd.f32 %v538_v62, %v518_v39  ;;  %v1191_v33 = vld [vmem:[#allocation2 + $0x148] sm:$0xff] }
  0x51   : > { %3355 = vst [vmem:[#allocation41_spill] sm:$0xff] %v2403_v15  ;;  %v2414_v63 = vmul.f32 %v2092_v21, %v574_v1  ;;  %v2417_v15 = vmul.f32 %v2108_v37, %v574_v1  ;;  %v1140_v14 = vadd.f32 %v1124_v11, %v1092_v12  ;;  %v1095_v13 = vmul.f32 %v1075_v27, %v2088_v16  ;;  %v1078_v12 = vld [vmem:[#allocation2 + $0x16f] sm:$0xff] }
  0x52   : > { %3356 = vst [vmem:[#allocation42_spill] sm:$0xff] %v2406_v59  ;;  %v1141_v51 = vadd.f32 %v1125_v0, %v1093_v61  ;;  %v2420_v59 = vadd.f32 %v1155_v35, %v1139_v34  ;;  %v1126_v52 = vmul.f32 %v1076_v9, %v2096_v29  ;;  %v2424_v5 = vmul.f32 %v2122_v47, %v575_v36  ;;  %v1192_v35 = vld [vmem:[#allocation2 + $0x150] sm:$0xff] }
  0x53   : > { %3357 = vst [vmem:[#allocation43_spill] sm:$0xff] %v2414_v63  ;;  %3358 = vst [vmem:[#allocation44_spill] sm:$0xff] %v2417_v15  ;;  %v2427_v39 = vmul.f32 %v2092_v21, %v575_v36  ;;  %v2430_v62 = vmul.f32 %v2108_v37, %v575_v36  ;;  %v1156_v1 = vmul.f32 %v1076_v9, %v2110_v38  ;;  %v1193_v15 = vld [vmem:[#allocation2 + $0x168] sm:$0xff] }
  0x54   : > { %3359 = vst [vmem:[#allocation45_spill] sm:$0xff] %v2420_v59  ;;  %3360 = vst [vmem:[#allocation46_spill] sm:$0xff] %v2424_v5  ;;  %v1096_v27 = vmul.f32 %v1076_v9, %v2088_v16  ;;  %v1142_v61 = vadd.f32 %v1126_v52, %v1094_v58  ;;  %v1127_v34 = vmul.f32 %v1077_v20, %v2096_v29 }
  0x55   : > { %3361 = vst [vmem:[#allocation47_spill] sm:$0xff] %v2427_v39  ;;  %3362 = vst [vmem:[#allocation48_spill] sm:$0xff] %v2430_v62  ;;  %v1157_v11 = vmul.f32 %v1077_v20, %v2110_v38  ;;  %v2437_v0 = vmul.f32 %v1191_v33, %v2092_v21  ;;  %v2440_v63 = vmul.f32 %v1191_v33, %v2108_v37  ;;  %v1079_v62 = vld [vmem:[#allocation2 + $0x187] sm:$0xff] }
  0x56   : > { %v2443_v36 = vmul.f32 %v1191_v33, %v2122_v47  ;;  %v2445_v39 = vadd.f32 %v1156_v1, %v1140_v14  ;;  %v1097_v9 = vmul.f32 %v1077_v20, %v2088_v16  ;;  %v1143_v52 = vadd.f32 %v1127_v34, %v1095_v13  ;;  %v1080_v1 = vld [vmem:[#allocation2 + $0x18f] sm:$0xff] }
  0x57   : > { %3363 = vst [vmem:[#allocation49_spill] sm:$0xff] %v2437_v0  ;;  %3364 = vst [vmem:[#allocation50_spill] sm:$0xff] %v2440_v63  ;;  %v2448_v58 = vadd.f32 %v1157_v11, %v1141_v51  ;;  %v1128_v59 = vmul.f32 %v1078_v12, %v2096_v29  ;;  %v2452_v5 = vmul.f32 %v1192_v35, %v2092_v21  ;;  %v1194_v51 = vld [vmem:[#allocation2 + $0x170] sm:$0xff] }
  0x58   : > { %3365 = vst [vmem:[#allocation51_spill] sm:$0xff] %v2443_v36  ;;  %3366 = vst [vmem:[#allocation52_spill] sm:$0xff] %v2445_v39  ;;  %v2455_v0 = vmul.f32 %v1192_v35, %v2108_v37  ;;  %v2458_v33 = vmul.f32 %v1192_v35, %v2122_v47  ;;  %v1158_v14 = vmul.f32 %v1078_v12, %v2110_v38 }
  0x59   : > { %3367 = vst [vmem:[#allocation53_spill] sm:$0xff] %v2448_v58  ;;  %3368 = vst [vmem:[#allocation54_spill] sm:$0xff] %v2452_v5  ;;  %v1098_v20 = vmul.f32 %v1078_v12, %v2088_v16  ;;  %v1144_v13 = vadd.f32 %v1128_v59, %v1096_v27  ;;  %v1129_v34 = vmul.f32 %v1079_v62, %v2096_v29  ;;  %v1195_v58 = vld [vmem:[#allocation2 + $0x188] sm:$0xff] }
  0x5a   : > { %3369 = vst [vmem:[#allocation55_spill] sm:$0xff] %v2455_v0  ;;  %3370 = vst [vmem:[#allocation56_spill] sm:$0xff] %v2458_v33  ;;  %v1159_v11 = vmul.f32 %v1079_v62, %v2110_v38  ;;  %v2465_v63 = vmul.f32 %v1193_v15, %v2092_v21  ;;  %v2468_v5 = vmul.f32 %v1193_v15, %v2108_v37  ;;  %v1081_v33 = vld [vmem:[#allocation2 + $0x1a7] sm:$0xff] }
  0x5b   : > { %v2471_v35 = vmul.f32 %v1193_v15, %v2122_v47  ;;  %v2473_v0 = vadd.f32 %v1158_v14, %v1142_v61  ;;  %v1099_v12 = vmul.f32 %v1079_v62, %v2088_v16  ;;  %v1145_v59 = vadd.f32 %v1129_v34, %v1097_v9  ;;  %v1082_v14 = vld [vmem:[#allocation2 + $0x1af] sm:$0xff] }
  0x5c   : > { %3371 = vst [vmem:[#allocation57_spill] sm:$0xff] %v2465_v63  ;;  %3372 = vst [vmem:[#allocation58_spill] sm:$0xff] %v2468_v5  ;;  %v2476_v27 = vadd.f32 %v1159_v11, %v1143_v52  ;;  %v1130_v39 = vmul.f32 %v1080_v1, %v2096_v29  ;;  %v2480_v36 = vmul.f32 %v1194_v51, %v2092_v21  ;;  %v1196_v52 = vld [vmem:[#allocation2 + $0x190] sm:$0xff] }
  0x5d   : > { %3373 = vst [vmem:[#allocation59_spill] sm:$0xff] %v2471_v35  ;;  %3374 = vst [vmem:[#allocation60_spill] sm:$0xff] %v2473_v0  ;;  %v2483_v63 = vmul.f32 %v1194_v51, %v2108_v37  ;;  %v2486_v15 = vmul.f32 %v1194_v51, %v2122_v47  ;;  %v1160_v61 = vmul.f32 %v1080_v1, %v2110_v38 }
  0x5e   : > { %3375 = vst [vmem:[#allocation61_spill] sm:$0xff] %v2476_v27  ;;  %3376 = vst [vmem:[#allocation62_spill] sm:$0xff] %v2480_v36  ;;  %v1100_v62 = vmul.f32 %v1080_v1, %v2088_v16  ;;  %v1146_v9 = vadd.f32 %v1130_v39, %v1098_v20  ;;  %v1131_v34 = vmul.f32 %v1081_v33, %v2096_v29  ;;  %v1083_v27 = vld [vmem:[#allocation2 + $0x1c7] sm:$0xff] }
  0x5f   : > { %3377 = vst [vmem:[#allocation63_spill] sm:$0xff] %v2483_v63  ;;  %3378 = vst [vmem:[#allocation64_spill] sm:$0xff] %v2486_v15  ;;  %v1161_v11 = vmul.f32 %v1081_v33, %v2110_v38  ;;  %v2493_v5 = vmul.f32 %v1195_v58, %v2092_v21  ;;  %v2496_v36 = vmul.f32 %v1195_v58, %v2108_v37  ;;  %v1197_v15 = vld [vmem:[#allocation2 + $0x1a8] sm:$0xff] }
  0x60   : > { %v2499_v51 = vmul.f32 %v1195_v58, %v2122_v47  ;;  %v2501_v63 = vadd.f32 %v1160_v61, %v1144_v13  ;;  %v1101_v1 = vmul.f32 %v1081_v33, %v2088_v16  ;;  %v1147_v39 = vadd.f32 %v1131_v34, %v1099_v12  ;;  %v1084_v61 = vld [vmem:[#allocation2 + $0x1cf] sm:$0xff] }
  0x61   : > { %3379 = vst [vmem:[#allocation65_spill] sm:$0xff] %v2493_v5  ;;  %3380 = vst [vmem:[#allocation66_spill] sm:$0xff] %v2496_v36  ;;  %v2504_v20 = vadd.f32 %v1161_v11, %v1145_v59  ;;  %v1132_v0 = vmul.f32 %v1082_v14, %v2096_v29  ;;  %v2508_v35 = vmul.f32 %v1196_v52, %v2092_v21  ;;  %v1198_v59 = vld [vmem:[#allocation2 + $0x1b0] sm:$0xff] }
  0x62   : > { %3381 = vst [vmem:[#allocation67_spill] sm:$0xff] %v2499_v51  ;;  %3382 = vst [vmem:[#allocation68_spill] sm:$0xff] %v2501_v63  ;;  %v2511_v5 = vmul.f32 %v1196_v52, %v2108_v37  ;;  %v2514_v58 = vmul.f32 %v1196_v52, %v2122_v47  ;;  %v1162_v13 = vmul.f32 %v1082_v14, %v2110_v38 }
  0x63   : > { %3383 = vst [vmem:[#allocation69_spill] sm:$0xff] %v2504_v20  ;;  %3384 = vst [vmem:[#allocation70_spill] sm:$0xff] %v2508_v35  ;;  %v1102_v33 = vmul.f32 %v1082_v14, %v2088_v16  ;;  %v1148_v12 = vadd.f32 %v1132_v0, %v1100_v62  ;;  %v1133_v34 = vmul.f32 %v1083_v27, %v2096_v29  ;;  %v1199_v20 = vld [vmem:[#allocation2 + $0x1c8] sm:$0xff] }
  0x64   : > { %3385 = vst [vmem:[#allocation71_spill] sm:$0xff] %v2511_v5  ;;  %3386 = vst [vmem:[#allocation72_spill] sm:$0xff] %v2514_v58  ;;  %v1163_v11 = vmul.f32 %v1083_v27, %v2110_v38  ;;  %v2521_v36 = vmul.f32 %v1197_v15, %v2092_v21  ;;  %v2524_v35 = vmul.f32 %v1197_v15, %v2108_v37  ;;  %v1085_v58 = vld [vmem:[#allocation2 + $0x1e7] sm:$0xff] }
  0x65   : > { %v2527_v52 = vmul.f32 %v1197_v15, %v2122_v47  ;;  %v2529_v5 = vadd.f32 %v1162_v13, %v1146_v9  ;;  %v1103_v14 = vmul.f32 %v1083_v27, %v2088_v16  ;;  %v1149_v0 = vadd.f32 %v1133_v34, %v1101_v1  ;;  %v1086_v13 = vld [vmem:[#allocation2 + $0x1ef] sm:$0xff] }
  0x66   : > { %3387 = vst [vmem:[#allocation73_spill] sm:$0xff] %v2521_v36  ;;  %3388 = vst [vmem:[#allocation74_spill] sm:$0xff] %v2524_v35  ;;  %v2532_v62 = vadd.f32 %v1163_v11, %v1147_v39  ;;  %v1134_v63 = vmul.f32 %v1084_v61, %v2096_v29  ;;  %v2536_v51 = vmul.f32 %v1198_v59, %v2092_v21  ;;  %v1200_v39 = vld [vmem:[#allocation2 + $0x1d0] sm:$0xff] }
  0x67   : > { %3389 = vst [vmem:[#allocation75_spill] sm:$0xff] %v2527_v52  ;;  %3390 = vst [vmem:[#allocation76_spill] sm:$0xff] %v2529_v5  ;;  %v2539_v36 = vmul.f32 %v1198_v59, %v2108_v37  ;;  %v2542_v15 = vmul.f32 %v1198_v59, %v2122_v47  ;;  %v1164_v9 = vmul.f32 %v1084_v61, %v2110_v38  ;;  %v1088_v5 = vld [vmem:[#allocation2 + $0x20f] sm:$0xff] }
  0x68   : > { %3391 = vst [vmem:[#allocation77_spill] sm:$0xff] %v2532_v62  ;;  %3392 = vst [vmem:[#allocation78_spill] sm:$0xff] %v2536_v51  ;;  %v1104_v27 = vmul.f32 %v1084_v61, %v2088_v16  ;;  %v1150_v1 = vadd.f32 %v1134_v63, %v1102_v33  ;;  %v1135_v34 = vmul.f32 %v1085_v58, %v2096_v29  ;;  %v1087_v62 = vld [vmem:[#allocation2 + $0x207] sm:$0xff] }
  0x69   : > { %3393 = vst [vmem:[#allocation79_spill] sm:$0xff] %v2539_v36  ;;  %3394 = vst [vmem:[#allocation80_spill] sm:$0xff] %v2542_v15  ;;  %v1165_v11 = vmul.f32 %v1085_v58, %v2110_v38  ;;  %v2549_v35 = vmul.f32 %v1199_v20, %v2092_v21  ;;  %v2552_v51 = vmul.f32 %v1199_v20, %v2108_v37  ;;  %v1201_v15 = vld [vmem:[#allocation2 + $0x1e8] sm:$0xff] }
  0x6a   : > { %v2555_v59 = vmul.f32 %v1199_v20, %v2122_v47  ;;  %v2557_v36 = vadd.f32 %v1164_v9, %v1148_v12  ;;  %v1105_v61 = vmul.f32 %v1085_v58, %v2088_v16  ;;  %v1151_v63 = vadd.f32 %v1135_v34, %v1103_v14  ;;  %v1202_v9 = vld [vmem:[#allocation2 + $0x1f0] sm:$0xff] }
  0x6b   : > { %3395 = vst [vmem:[#allocation81_spill] sm:$0xff] %v2549_v35  ;;  %3396 = vst [vmem:[#allocation82_spill] sm:$0xff] %v2552_v51  ;;  %v2560_v33 = vadd.f32 %v1165_v11, %v1149_v0  ;;  %v1136_v52 = vmul.f32 %v1086_v13, %v2096_v29  ;;  %v2564_v35 = vmul.f32 %v1200_v39, %v2092_v21 }
  0x6c   : > { %v2567_v51 = vmul.f32 %v1200_v39, %v2108_v37  ;;  %v1106_v20 = vmul.f32 %v1086_v13, %v2088_v16  ;;  %v1166_v12 = vmul.f32 %v1086_v13, %v2110_v38  ;;  %v2572_v58 = vmul.f32 %v1200_v39, %v2122_v47  ;;  %v1204_v13 = vld [vmem:[#allocation2 + $0x210] sm:$0xff] }
  0x6d   : > { %3397 = vst [vmem:[#allocation83_spill] sm:$0xff] %v2560_v33  ;;  %3398 = vst [vmem:[#allocation84_spill] sm:$0xff] %v2564_v35  ;;  %v1152_v14 = vadd.f32 %v1136_v52, %v1104_v27  ;;  %v1137_v0 = vmul.f32 %v1087_v62, %v2096_v29  ;;  %v1167_v34 = vmul.f32 %v1087_v62, %v2110_v38  ;;  %v1203_v35 = vld [vmem:[#allocation2 + $0x208] sm:$0xff] }
  0x6e   : > { %3399 = vst [vmem:[#allocation85_spill] sm:$0xff] %v2567_v51  ;;  %v2577_v11 = vmul.f32 %v1201_v15, %v2108_v37  ;;  %v2579_v21 = vadd.f32 %v1166_v12, %v1150_v1  ;;  %v1138_v51 = vmul.f32 %v1088_v5, %v2096_v29  ;;  %v1168_v16 = vmul.f32 %v1088_v5, %v2110_v38  ;;  %v2594_v62 = vld [vmem:[%s3307_s0 + $0x8] ss:$0 sm:$0xff]  ;;  %v686_v1 = vld [vmem:[#allocation2 + $0x29] sm:$0xff] }
  0x6f   : > { %v2584_v33 = vmul.f32 %v1201_v15, %v2122_v47  ;;  %v2587_v52 = vmul.f32 %v1202_v9, %v2108_v37  ;;  %v1153_v27 = vadd.f32 %v1137_v0, %v1105_v61  ;;  %v2589_v39 = vadd.f32 %v1167_v34, %v1151_v63  ;;  %v688_v12 = vld [vmem:[#allocation2 + $0x49] sm:$0xff]  ;;  %v687_v37 = vld [vmem:[#allocation2 + $0x31] sm:$0xff] }
  0x70   : > { %v2597_v29 = vmul.f32 %v1202_v9, %v2122_v47  ;;  %v1154_v38 = vadd.f32 %v1138_v51, %v1106_v20  ;;  %v2599_v5 = vadd.f32 %v1168_v16, %v1152_v14  ;;  %v596_v15 = vadd.f32 %v2120_v43, %v2185_v23  ;;  %v689_v61 = vld [vmem:[#allocation2 + $0x51] sm:$0xff]  ;;  %v690_v9 = vld [vmem:[#allocation2 + $0x69] sm:$0xff] }
  0x71   : > { %v2604_v63 = vmul.f32 %v1203_v35, %v2122_v47  ;;  %v2607_v0 = vadd.f32 %v2134_v54, %v1153_v27  ;;  %v2610_v34 = vmul.f32 %v1204_v13, %v2122_v47  ;;  %v597_v51 = vadd.f32 %v2130_v49, %v2202_v42  ;;  %v2630_v13 = vld [vmem:[#allocation2 + $0x71] sm:$0xff] }
  0x72   : > { %v2615_v20 = vadd.f32 %v2141_v57, %v1154_v38  ;;  %v632_v43 = vadd.f32 %v2158_v4, %v596_v15  ;;  %v744_v23 = vmul.f32 %v2127_v48, %v686_v1  ;;  %v598_v35 = vadd.f32 %v2155_v3, %v2215_v56 }
  0x73   : > { %v780_v54 = vmul.f32 %v2594_v62, %v688_v12  ;;  %v633_v14 = vadd.f32 %v2168_v10, %v597_v51  ;;  %v745_v47 = vmul.f32 %v2127_v48, %v687_v37  ;;  %v781_v16 = vmul.f32 %v2594_v62, %v689_v61 }
  0x74   : > { %v668_v49 = vadd.f32 %v2183_v19, %v632_v43  ;;  %v634_v57 = vadd.f32 %v2180_v18, %v598_v35  ;;  %v710_v4 = vmul.f32 %v2100_v32, %v686_v1  ;;  %v599_v42 = vadd.f32 %v2162_v6, %v2240_v22 }
  0x75   : > { %v669_v3 = vadd.f32 %v2197_v31, %v633_v14  ;;  %v746_v56 = vmul.f32 %v2127_v48, %v688_v12  ;;  %v782_v10 = vmul.f32 %v2594_v62, %v690_v9  ;;  %v600_v27 = vadd.f32 %v2177_v17, %v2252_v40 }
  0x76   : > { %v724_v19 = vadd.f32 %v2137_v55, %v668_v49  ;;  %v670_v18 = vadd.f32 %v2211_v46, %v634_v57  ;;  %v635_v1 = vadd.f32 %v2194_v30, %v599_v42  ;;  %v711_v38 = vmul.f32 %v2100_v32, %v687_v37  ;;  %v2647_v55 = vld [vmem:[#allocation2 + $0x89] sm:$0xff]  ;;  %v2654_v37 = vld [vmem:[%s3308_s1] ss:$0 sm:$0xff]  ;;  %v2666_v42 = vld [vmem:[#allocation2 + $0x91] sm:$0xff] }
  0x77   : > { %v725_v6 = vadd.f32 %v2152_v2, %v669_v3  ;;  %v747_v22 = vmul.f32 %v2127_v48, %v689_v61  ;;  %v783_v31 = vmul.f32 %v2594_v62, %v2630_v13  ;;  %v636_v15 = vadd.f32 %v2208_v45, %v600_v27 }
  0x78   : > { %v760_v51 = vadd.f32 %v744_v23, %v724_v19  ;;  %v726_v43 = vadd.f32 %v710_v4, %v670_v18  ;;  %v671_v17 = vadd.f32 %v2232_v8, %v635_v1  ;;  %v601_v30 = vadd.f32 %v2191_v28, %v2285_v41 }
  0x79   : > { %v761_v2 = vadd.f32 %v745_v47, %v725_v6  ;;  %v672_v46 = vadd.f32 %v2249_v24, %v636_v15  ;;  %v712_v40 = vmul.f32 %v2100_v32, %v688_v12  ;;  %v748_v45 = vmul.f32 %v2127_v48, %v690_v9 }
  0x7a   : > { %v796_v23 = vadd.f32 %v780_v54, %v760_v51  ;;  %v762_v35 = vadd.f32 %v746_v56, %v726_v43  ;;  %v727_v8 = vadd.f32 %v711_v38, %v671_v17  ;;  %v637_v14 = vadd.f32 %v2229_v7, %v601_v30 }
  0x7b   : > { %v797_v49 = vadd.f32 %v781_v16, %v761_v2  ;;  %v728_v57 = vadd.f32 %v712_v40, %v672_v46  ;;  %v784_v28 = vmul.f32 %v2594_v62, %v2647_v55  ;;  %v602_v41 = vadd.f32 %v2205_v44, %v2299_v50 }
  0x7c   : > { %v818_v47 = vadd.f32 %v2654_v37, %v796_v23  ;;  %v798_v24 = vadd.f32 %v782_v10, %v762_v35  ;;  %v763_v4 = vadd.f32 %v747_v22, %v727_v8  ;;  %v673_v12 = vadd.f32 %v2268_v53, %v637_v14 }
  0x7d   : > { %v819_v54 = vadd.f32 %v2654_v37, %v797_v49  ;;  %v764_v3 = vadd.f32 %v748_v45, %v728_v57  ;;  %v713_v7 = vmul.f32 %v2100_v32, %v689_v61  ;;  %v638_v16 = vadd.f32 %v2246_v26, %v602_v41 }
  0x7e   : > { %v850_v56 = vmul.f32 0.044715, %v818_v47  ;;  %v820_v27 = vadd.f32 %v2654_v37, %v798_v24  ;;  %v799_v19 = vadd.f32 %v783_v31, %v763_v4  ;;  %v749_v44 = vmul.f32 %v2127_v48, %v2630_v13  ;;  %v3400_v31 = vld [vmem:[#allocation13_spill] sm:$0xff] }
  0x7f   : > { %v851_v50 = vmul.f32 0.044715, %v819_v54  ;;  %v800_v10 = vadd.f32 %v784_v28, %v764_v3  ;;  %v729_v18 = vadd.f32 %v713_v7, %v673_v12  ;;  %v785_v53 = vmul.f32 %v2594_v62, %v2666_v42 }
  0x80   : > { %v866_v1 = vmul.f32 %v850_v56, %v818_v47  ;;  %v852_v38 = vmul.f32 0.044715, %v820_v27  ;;  %v821_v6 = vadd.f32 %v2654_v37, %v799_v19  ;;  %v714_v61 = vmul.f32 %v2100_v32, %v690_v9  ;;  %v2684_v9 = vld [vmem:[#allocation2 + $0xa9] sm:$0xff] }
  0x81   : > { %v867_v26 = vmul.f32 %v851_v50, %v819_v54  ;;  %v822_v22 = vadd.f32 %v2654_v37, %v800_v10  ;;  %v765_v15 = vadd.f32 %v749_v44, %v729_v18  ;;  %v674_v51 = vadd.f32 %v3400_v31, %v638_v16 }
  0x82   : > { %v2680_v43 = vmul.f32 0.5, %v818_v47  ;;  %v882_v17 = vmul.f32 %v866_v1, %v818_v47  ;;  %v868_v30 = vmul.f32 %v852_v38, %v820_v27  ;;  %v853_v2 = vmul.f32 0.044715, %v821_v6  ;;  %v3402_v1 = vld [vmem:[#allocation7_spill] sm:$0xff] }
  0x83   : > { %v2682_v46 = vmul.f32 0.5, %v819_v54  ;;  %v883_v40 = vmul.f32 %v867_v26, %v819_v54  ;;  %v854_v45 = vmul.f32 0.044715, %v822_v22  ;;  %v801_v23 = vadd.f32 %v785_v53, %v765_v15  ;;  %v3401_v53 = vld [vmem:[#allocation17_spill] sm:$0xff] }
  0x84   : > { %v898_v35 = vadd.f32 %v882_v17, %v818_v47  ;;  %v884_v8 = vmul.f32 %v868_v30, %v820_v27  ;;  %v869_v14 = vmul.f32 %v853_v2, %v821_v6  ;;  %v730_v49 = vadd.f32 %v714_v61, %v674_v51  ;;  %v3403_v17 = vld [vmem:[#allocation10_spill] sm:$0xff] }
  0x85   : > { %v899_v57 = vadd.f32 %v883_v40, %v819_v54  ;;  %v2686_v28 = vmul.f32 0.5, %v820_v27  ;;  %v870_v41 = vmul.f32 %v854_v45, %v822_v22  ;;  %v823_v24 = vadd.f32 %v2654_v37, %v801_v23  ;;  %v2700_v2 = vld [vmem:[#allocation2 + $0xb1] sm:$0xff] }
  0x86   : > { %v914_v4 = vmul.f32 0.7978846, %v898_v35  ;;  %v900_v12 = vadd.f32 %v884_v8, %v820_v27  ;;  %v885_v3 = vmul.f32 %v869_v14, %v821_v6  ;;  %v750_v7 = vmul.f32 %v2127_v48, %v2647_v55  ;;  %v3404_v23 = vld [vmem:[#allocation21_spill] sm:$0xff]  ;;  %v3405_v35 = vld [vmem:[#allocation8_spill] sm:$0xff] }
  0x87   : > { %v915_v16 = vmul.f32 0.7978846, %v899_v57  ;;  %v886_v56 = vmul.f32 %v870_v41, %v822_v22  ;;  %v855_v47 = vmul.f32 0.044715, %v823_v24  ;;  %v786_v19 = vmul.f32 %v2594_v62, %v2684_v9  ;;  %v3406_v14 = vld [vmem:[#allocation16_spill] sm:$0xff] }
  0x88   : > { %1858 = vtanh.f32 %v914_v4  ;;  %v916_v44 = vmul.f32 0.7978846, %v900_v12  ;;  %v901_v54 = vadd.f32 %v885_v3, %v821_v6  ;;  %v766_v50 = vadd.f32 %v750_v7, %v730_v49  ;;  %v2712_v57 = vld [vmem:[#allocation2 + $0xc9] sm:$0xff] }
  0x89   : > { %1860 = vtanh.f32 %v915_v16  ;;  %v902_v10 = vadd.f32 %v886_v56, %v822_v22  ;;  %v871_v18 = vmul.f32 %v855_v47, %v823_v24  ;;  %v603_v27 = vadd.f32 %v3402_v1, %v3401_v53  ;;  %v3407_v3 = vld [vmem:[#allocation12_spill] sm:$0xff]  ;;  %v3408_v47 = vld [vmem:[#allocation25_spill] sm:$0xff] }
  0x8a   : > { %1862 = vtanh.f32 %v916_v44  ;;  %v2695_v38 = vmul.f32 0.5, %v821_v6  ;;  %v917_v61 = vmul.f32 0.7978846, %v901_v54  ;;  %v802_v26 = vadd.f32 %v786_v19, %v766_v50  ;;  %v3409_v19 = vld [vmem:[#allocation9_spill] sm:$0xff]  ;;  %v3410_v54 = vld [vmem:[#allocation20_spill] sm:$0xff] }
  0x8b   : > { %v2697_v15 = vmul.f32 0.5, %v822_v22  ;;  %v918_v31 = vmul.f32 0.7978846, %v902_v10  ;;  %v887_v51 = vmul.f32 %v871_v18, %v823_v24  ;;  %v639_v30 = vadd.f32 %v3403_v17, %v603_v27  ;;  %v2730_v53 = vld [vmem:[#allocation2 + $0xd1] sm:$0xff]  ;;  %v3411_v27 = vld [vmem:[#allocation15_spill] sm:$0xff] }
  0x8c   : > { %1864 = vtanh.f32 %v917_v61  ;;  %v2702_v40 = vmul.f32 0.5, %v823_v24  ;;  %v2705_v45 = vadd.f32 %v2654_v37, %v802_v26  ;;  %v604_v6 = vadd.f32 %v3405_v35, %v3404_v23  ;;  %v3413_v23 = vld [vmem:[#allocation11_spill] sm:$0xff] }
  0x8d   : > { %1866 = vtanh.f32 %v918_v31  ;;  %v903_v8 = vadd.f32 %v887_v51, %v823_v24  ;;  %v675_v22 = vadd.f32 %v3406_v14, %v639_v30  ;;  %v715_v49 = vmul.f32 %v2100_v32, %v2630_v13  ;;  %v3412_v30 = vld [vmem:[#allocation29_spill] sm:$0xff] }
  0x8e   : > { %v856_v41 = vmul.f32 0.044715, %v2705_v45  ;;  %v751_v4 = vmul.f32 %v2127_v48, %v2666_v42  ;;  %v787_v12 = vmul.f32 %v2594_v62, %v2700_v2  ;;  %v640_v7 = vadd.f32 %v3407_v3, %v604_v6 }
  0x8f   : > { %v919_v16 = vmul.f32 0.7978846, %v903_v8  ;;  %v731_v56 = vadd.f32 %v715_v49, %v675_v22  ;;  %v716_v24 = vmul.f32 %v2100_v32, %v2647_v55  ;;  %v605_v13 = vadd.f32 %v3409_v19, %v3408_v47  ;;  %v3414_v22 = vld [vmem:[#allocation24_spill] sm:$0xff] }
  0x90   : > { %v872_v44 = vmul.f32 %v856_v41, %v2705_v45  ;;  %v676_v50 = vadd.f32 %v3410_v54, %v640_v7  ;;  %v752_v10 = vmul.f32 %v2127_v48, %v2684_v9  ;;  %v788_v18 = vmul.f32 %v2594_v62, %v2712_v57  ;;  %v2759_v54 = vld [vmem:[%s3310_s3] ss:$0 sm:$0xff] }
  0x91   : > { %1868 = vtanh.f32 %v919_v16  ;;  %v767_v1 = vadd.f32 %v751_v4, %v731_v56  ;;  %v641_v61 = vadd.f32 %v3411_v27, %v605_v13  ;;  %v717_v55 = vmul.f32 %v2100_v32, %v2666_v42  ;;  %v2746_v42 = vld [vmem:[%s3309_s2] ss:$0 sm:$0xff] }
  0x92   : > { %v1859_v26 = vpop.eup %1858  ;;  %v888_v31 = vmul.f32 %v872_v44, %v2705_v45  ;;  %v732_v51 = vadd.f32 %v716_v24, %v676_v50  ;;  %v753_v17 = vmul.f32 %v2127_v48, %v2700_v2  ;;  %v606_v35 = vadd.f32 %v3413_v23, %v3412_v30  ;;  %v3415_v56 = vld [vmem:[#allocation19_spill] sm:$0xff] }
  0x93   : > { %v1861_v6 = vpop.eup %1860  ;;  %v946_v8 = vadd.f32 1.0, %v1859_v26  ;;  %v803_v14 = vadd.f32 %v787_v12, %v767_v1  ;;  %v677_v49 = vadd.f32 %v3414_v22, %v641_v61  ;;  %v789_v41 = vmul.f32 %v2594_v62, %v2730_v53 }
  0x94   : > { %v1863_v4 = vpop.eup %1862  ;;  %v947_v3 = vadd.f32 1.0, %v1861_v6  ;;  %v904_v7 = vadd.f32 %v888_v31, %v2705_v45  ;;  %v768_v16 = vadd.f32 %v752_v10, %v732_v51  ;;  %v642_v24 = vadd.f32 %v3415_v56, %v606_v35  ;;  %v3416_v51 = vld [vmem:[#allocation28_spill] sm:$0xff]  ;;  %v1923_v56 = vld [vmem:[#allocation2 + $0x30] sm:$0xff] }
  0x95   : > { %v962_v47 = vmul.f32 %v946_v8, %v2680_v43  ;;  %v948_v12 = vadd.f32 1.0, %v1863_v4  ;;  %v2752_v19 = vadd.f32 %v2654_v37, %v803_v14  ;;  %v718_v13 = vmul.f32 %v2100_v32, %v2684_v9  ;;  %v1922_v4 = vld [vmem:[#allocation2 + $0x28] sm:$0xff] }
  0x96   : > { %v1865_v44 = vpop.eup %1864  ;;  %v963_v50 = vmul.f32 %v947_v3, %v2682_v46  ;;  %v920_v10 = vmul.f32 0.7978846, %v904_v7  ;;  %v804_v1 = vadd.f32 %v788_v18, %v768_v16  ;;  %v733_v27 = vadd.f32 %v717_v55, %v677_v49 }
  0x97   : > { %v1867_v43 = vpop.eup %1866  ;;  %v984_v61 = vmul.f32 %v2746_v42, %v962_v47  ;;  %v964_v26 = vmul.f32 %v948_v12, %v2686_v28  ;;  %v949_v31 = vadd.f32 1.0, %v1865_v44  ;;  %v678_v9 = vadd.f32 %v3416_v51, %v642_v24  ;;  %v1924_v44 = vld [vmem:[#allocation2 + $0x48] sm:$0xff]  ;;  %v1925_v51 = vld [vmem:[#allocation2 + $0x50] sm:$0xff] }
  0x98   : > { %v985_v30 = vmul.f32 %v2746_v42, %v963_v50  ;;  %v950_v23 = vadd.f32 1.0, %v1867_v43  ;;  %1870 = vtanh.f32 %v920_v10  ;;  %v857_v35 = vmul.f32 0.044715, %v2752_v19 }
  0x99   : > { %v1006_v46 = vadd.f32 %v2759_v54, %v984_v61  ;;  %v986_v6 = vmul.f32 %v2746_v42, %v964_v26  ;;  %v965_v18 = vmul.f32 %v949_v31, %v2695_v38  ;;  %v826_v55 = vadd.f32 %v2654_v37, %v804_v1 }
  0x9a   : > { %v1007_v28 = vadd.f32 %v2759_v54, %v985_v30  ;;  %v966_v8 = vmul.f32 %v950_v23, %v2697_v15  ;;  %v873_v14 = vmul.f32 %v857_v35, %v2752_v19  ;;  %v769_v22 = vadd.f32 %v753_v17, %v733_v27  ;;  %v2787_v17 = vld [vmem:[#allocation2 + $0xe9] sm:$0xff] }
  0x9b   : > { %v1869_v49 = vpop.eup %1868  ;;  %v1038_v3 = vadd.f32 %v1922_v4, %v1006_v46  ;;  %v1008_v38 = vadd.f32 %v2759_v54, %v986_v6  ;;  %v987_v7 = vmul.f32 %v2746_v42, %v965_v18  ;;  %v754_v16 = vmul.f32 %v2127_v48, %v2712_v57  ;;  %v1926_v46 = vld [vmem:[#allocation2 + $0x68] sm:$0xff] }
  0x9c   : > { %v1039_v24 = vadd.f32 %v1923_v56, %v1007_v28  ;;  %v988_v47 = vmul.f32 %v2746_v42, %v966_v8  ;;  %v951_v15 = vadd.f32 1.0, %v1869_v49  ;;  %v889_v12 = vmul.f32 %v873_v14, %v2752_v19  ;;  %v3417_v14 = vld [vmem:[#allocation14_spill] sm:$0xff] }
  0x9d   : > { %1054 = vst.msk [vmem:[%s2776_s13] sm:$0xff] %vm315_vm0, %v1038_v3  ;;  %v1040_v50 = vadd.f32 %v1924_v44, %v1008_v38  ;;  %v1009_v10 = vadd.f32 %v2759_v54, %v987_v7  ;;  %v858_v1 = vmul.f32 0.044715, %v826_v55  ;;  %v805_v27 = vadd.f32 %v789_v41, %v769_v22 }
  0x9e   : > { %1055 = vst.msk [vmem:[%s2776_s13 + $0x8] sm:$0xff] %vm315_vm0, %v1039_v24  ;;  %v1010_v43 = vadd.f32 %v2759_v54, %v988_v47  ;;  %v967_v61 = vmul.f32 %v951_v15, %v2702_v40  ;;  %v905_v26 = vadd.f32 %v889_v12, %v2752_v19  ;;  %v734_v31 = vadd.f32 %v718_v13, %v678_v9  ;;  %v3418_v24 = vld [vmem:[#allocation23_spill] sm:$0xff]  ;;  %v1927_v47 = vld [vmem:[#allocation2 + $0x70] sm:$0xff] }
  0x9f   : > { %1056 = vst.msk [vmem:[%s2776_s13 + $0x10] sm:$0xff] %vm315_vm0, %v1040_v50  ;;  %v1041_v30 = vadd.f32 %v1925_v51, %v1009_v10  ;;  %v874_v23 = vmul.f32 %v858_v1, %v826_v55  ;;  %v827_v35 = vadd.f32 %v2654_v37, %v805_v27  ;;  %v790_v41 = vmul.f32 %v2594_v62, %v2787_v17  ;;  %v3419_v1 = vld [vmem:[#allocation32_spill] sm:$0xff]  ;;  %v3421_v51 = vld [vmem:[#allocation18_spill] sm:$0xff] }
  0xa0   : > { %v1042_v6 = vadd.f32 %v1926_v46, %v1010_v43  ;;  %v989_v18 = vmul.f32 %v2746_v42, %v967_v61  ;;  %v921_v28 = vmul.f32 0.7978846, %v905_v26  ;;  %v770_v40 = vadd.f32 %v754_v16, %v734_v31  ;;  %v2821_v43 = vld [vmem:[#allocation2 + $0xf1] sm:$0xff]  ;;  %v3420_v31 = vld [vmem:[#allocation36_spill] sm:$0xff] }
  0xa1   : > { %1057 = vst.msk [vmem:[%s2776_s13 + $0x18] sm:$0xff] %vm315_vm0, %v1041_v30  ;;  %v840_v13 = vmul.f32 0.5, %v2705_v45  ;;  %v890_v9 = vmul.f32 %v874_v23, %v826_v55  ;;  %v859_v8 = vmul.f32 0.044715, %v827_v35  ;;  %v607_v22 = vadd.f32 %v3417_v14, %v2374_v60 }
  0xa2   : > { %v1871_v49 = vpop.eup %1870  ;;  %1058 = vst.msk [vmem:[%s2776_s13 + $0x20] sm:$0xff] %vm315_vm0, %v1042_v6  ;;  %v1011_v4 = vadd.f32 %v2759_v54, %v989_v18  ;;  %v841_v3 = vmul.f32 0.5, %v2752_v19  ;;  %1872 = vtanh.f32 %v921_v28  ;;  %v806_v38 = vadd.f32 %v790_v41, %v770_v40  ;;  %v3422_v28 = vld [vmem:[#allocation27_spill] sm:$0xff] }
  0xa3   : > { %v952_v7 = vadd.f32 1.0, %v1871_v49  ;;  %v906_v16 = vadd.f32 %v890_v9, %v826_v55  ;;  %v875_v56 = vmul.f32 %v859_v8, %v827_v35  ;;  %v643_v45 = vadd.f32 %v3418_v24, %v607_v22  ;;  %v3423_v22 = vld [vmem:[#allocation39_spill] sm:$0xff]  ;;  %v3424_v49 = vld [vmem:[#allocation22_spill] sm:$0xff]  ;;  %v1928_v24 = vld [vmem:[#allocation2 + $0x88] sm:$0xff] }
  0xa4   : > { %v1043_v15 = vadd.f32 %v1927_v47, %v1011_v4  ;;  %v2813_v12 = vmul.f32 0.5, %v826_v55  ;;  %v2816_v60 = vadd.f32 %v2654_v37, %v806_v38  ;;  %v719_v44 = vmul.f32 %v2100_v32, %v2700_v2  ;;  %v2832_v2 = vld [vmem:[#allocation2 + $0x109] sm:$0xff]  ;;  %v3425_v38 = vld [vmem:[#allocation34_spill] sm:$0xff]  ;;  %v3426_v47 = vld [vmem:[#allocation31_spill] sm:$0xff] }
  0xa5   : > { %v968_v50 = vmul.f32 %v952_v7, %v840_v13  ;;  %v922_v19 = vmul.f32 0.7978846, %v906_v16  ;;  %v891_v10 = vmul.f32 %v875_v56, %v827_v35  ;;  %v679_v27 = vadd.f32 %v3419_v1, %v643_v45 }
  0xa6   : > { %1059 = vst.msk [vmem:[%s2776_s13 + $0x28] sm:$0xff] %vm315_vm0, %v1043_v15  ;;  %v2825_v61 = vmul.f32 0.5, %v827_v35  ;;  %v860_v55 = vmul.f32 0.044715, %v2816_v60  ;;  %v755_v26 = vmul.f32 %v2127_v48, %v2730_v53  ;;  %v608_v30 = vadd.f32 %v3421_v51, %v3420_v31  ;;  %v3428_v51 = vld [vmem:[#allocation38_spill] sm:$0xff] }
  0xa7   : > { %v990_v23 = vmul.f32 %v2746_v42, %v968_v50  ;;  %1874 = vtanh.f32 %v922_v19  ;;  %v907_v41 = vadd.f32 %v891_v10, %v827_v35  ;;  %v735_v46 = vadd.f32 %v719_v44, %v679_v27  ;;  %v2851_v44 = vld [vmem:[#allocation2 + $0x111] sm:$0xff] }
  0xa8   : > { %v876_v6 = vmul.f32 %v860_v55, %v2816_v60  ;;  %v791_v18 = vmul.f32 %v2594_v62, %v2821_v43  ;;  %v644_v40 = vadd.f32 %v3422_v28, %v608_v30  ;;  %v720_v13 = vmul.f32 %v2100_v32, %v2712_v57  ;;  %v3427_v27 = vld [vmem:[#allocation26_spill] sm:$0xff] }
  0xa9   : > { %v1012_v9 = vadd.f32 %v2759_v54, %v990_v23  ;;  %v923_v8 = vmul.f32 0.7978846, %v907_v41  ;;  %v771_v14 = vadd.f32 %v755_v26, %v735_v46  ;;  %v609_v4 = vadd.f32 %v3424_v49, %v3423_v22 }
  0xaa   : > { %v892_v35 = vmul.f32 %v876_v6, %v2816_v60  ;;  %v680_v7 = vadd.f32 %v3425_v38, %v644_v40  ;;  %v756_v16 = vmul.f32 %v2127_v48, %v2787_v17  ;;  %v792_v56 = vmul.f32 %v2594_v62, %v2832_v2 }
  0xab   : > { %v1044_v57 = vadd.f32 %v1928_v24, %v1012_v9  ;;  %1876 = vtanh.f32 %v923_v8  ;;  %v807_v45 = vadd.f32 %v791_v18, %v771_v14  ;;  %v645_v15 = vadd.f32 %v3426_v47, %v609_v4  ;;  %v3429_v18 = vld [vmem:[#allocation33_spill] sm:$0xff] }
  0xac   : > { %v1873_v50 = vpop.eup %1872  ;;  %v908_v19 = vadd.f32 %v892_v35, %v2816_v60  ;;  %v736_v10 = vadd.f32 %v720_v13, %v680_v7  ;;  %v721_v1 = vmul.f32 %v2100_v32, %v2730_v53  ;;  %v610_v55 = vadd.f32 %v3427_v27, %v2411_v25  ;;  %v2867_v13 = vld [vmem:[#allocation2 + $0x129] sm:$0xff] }
  0xad   : > { %1060 = vst.msk [vmem:[%s2776_s13 + $0x30] sm:$0xff] %vm315_vm0, %v1044_v57  ;;  %v953_v26 = vadd.f32 1.0, %v1873_v50  ;;  %v829_v31 = vadd.f32 %v2654_v37, %v807_v45  ;;  %v681_v30 = vadd.f32 %v3428_v51, %v645_v15  ;;  %v757_v23 = vmul.f32 %v2127_v48, %v2821_v43  ;;  %v3430_v14 = vld [vmem:[#allocation41_spill] sm:$0xff] }
  0xae   : > { %v924_v41 = vmul.f32 0.7978846, %v908_v19  ;;  %v772_v46 = vadd.f32 %v756_v16, %v736_v10  ;;  %v793_v6 = vmul.f32 %v2594_v62, %v2851_v44  ;;  %v646_v53 = vadd.f32 %v3429_v18, %v610_v55  ;;  %v3432_v16 = vld [vmem:[#allocation30_spill] sm:$0xff]  ;;  %v3433_v19 = vld [vmem:[#allocation37_spill] sm:$0xff] }
  0xaf   : > { %v969_v28 = vmul.f32 %v953_v26, %v841_v3  ;;  %v861_v40 = vmul.f32 0.044715, %v829_v31  ;;  %v737_v25 = vadd.f32 %v721_v1, %v681_v30  ;;  %v722_v9 = vmul.f32 %v2100_v32, %v2787_v17  ;;  %v3431_v3 = vld [vmem:[#allocation42_spill] sm:$0xff]  ;;  %v1929_v30 = vld [vmem:[#allocation2 + $0x90] sm:$0xff] }
  0xb0   : > { %1878 = vtanh.f32 %v924_v41  ;;  %v808_v8 = vadd.f32 %v792_v56, %v772_v46  ;;  %v682_v22 = vadd.f32 %v3430_v14, %v646_v53  ;;  %v758_v49 = vmul.f32 %v2832_v2, %v2127_v48  ;;  %v3434_v18 = vld [vmem:[#allocation46_spill] sm:$0xff] }
  0xb1   : > { %v1875_v4 = vpop.eup %1874  ;;  %v991_v35 = vmul.f32 %v2746_v42, %v969_v28  ;;  %v877_v38 = vmul.f32 %v861_v40, %v829_v31  ;;  %v773_v7 = vadd.f32 %v757_v23, %v737_v25  ;;  %v611_v24 = vadd.f32 %v3432_v16, %v3431_v3 }
  0xb2   : > { %v954_v57 = vadd.f32 1.0, %v1875_v4  ;;  %v830_v45 = vadd.f32 %v2654_v37, %v808_v8  ;;  %v738_v47 = vadd.f32 %v722_v9, %v682_v22  ;;  %v794_v17 = vmul.f32 %v2594_v62, %v2867_v13 }
  0xb3   : > { %v1013_v56 = vadd.f32 %v2759_v54, %v991_v35  ;;  %v893_v15 = vmul.f32 %v877_v38, %v829_v31  ;;  %v809_v50 = vadd.f32 %v793_v6, %v773_v7  ;;  %v647_v10 = vadd.f32 %v3433_v19, %v611_v24  ;;  %v1030_v38 = vld [vmem:[#allocation2 + $0xa8] sm:$0xff] }
  0xb4   : > { %v970_v1 = vmul.f32 %v954_v57, %v2813_v12  ;;  %v862_v27 = vmul.f32 0.044715, %v830_v45  ;;  %v774_v55 = vadd.f32 %v758_v49, %v738_v47  ;;  %v723_v26 = vmul.f32 %v2100_v32, %v2821_v43  ;;  %v2891_v43 = vld [vmem:[#allocation2 + $0x131] sm:$0xff] }
  0xb5   : > { %v1877_v51 = vpop.eup %1876  ;;  %v1045_v23 = vadd.f32 %v1929_v30, %v1013_v56  ;;  %v909_v41 = vadd.f32 %v893_v15, %v829_v31  ;;  %v831_v46 = vadd.f32 %v2654_v37, %v809_v50  ;;  %v683_v53 = vadd.f32 %v3434_v18, %v647_v10 }
  0xb6   : > { %v992_v6 = vmul.f32 %v2746_v42, %v970_v1  ;;  %v955_v28 = vadd.f32 1.0, %v1877_v51  ;;  %v878_v40 = vmul.f32 %v862_v27, %v830_v45  ;;  %v810_v25 = vadd.f32 %v794_v17, %v774_v55  ;;  %v3436_v1 = vld [vmem:[#allocation35_spill] sm:$0xff]  ;;  %v1031_v55 = vld [vmem:[#allocation2 + $0xb0] sm:$0xff] }
  0xb7   : > { %1061 = vst.msk [vmem:[%s2776_s13 + $0x38] sm:$0xff] %vm315_vm0, %v1045_v23  ;;  %v844_v12 = vmul.f32 0.5, %v2816_v60  ;;  %v925_v9 = vmul.f32 0.7978846, %v909_v41  ;;  %v863_v8 = vmul.f32 0.044715, %v831_v46  ;;  %v739_v14 = vadd.f32 %v723_v26, %v683_v53 }
  0xb8   : > { %v1014_v22 = vadd.f32 %v2759_v54, %v992_v6  ;;  %v971_v49 = vmul.f32 %v955_v28, %v2825_v61  ;;  %v894_v4 = vmul.f32 %v878_v40, %v830_v45  ;;  %v832_v35 = vadd.f32 %v2654_v37, %v810_v25  ;;  %v3437_v53 = vld [vmem:[#allocation44_spill] sm:$0xff] }
  0xb9   : > { %v845_v7 = vmul.f32 0.5, %v829_v31  ;;  %1880 = vtanh.f32 %v925_v9  ;;  %v879_v3 = vmul.f32 %v863_v8, %v831_v46  ;;  %v759_v60 = vmul.f32 %v2127_v48, %v2851_v44  ;;  %v3435_v44 = vld [vmem:[#allocation45_spill] sm:$0xff] }
  0xba   : > { %v1879_v16 = vpop.eup %1878  ;;  %v1046_v24 = vadd.f32 %v1030_v38, %v1014_v22  ;;  %v993_v57 = vmul.f32 %v2746_v42, %v971_v49  ;;  %v910_v47 = vadd.f32 %v894_v4, %v830_v45  ;;  %v795_v17 = vmul.f32 %v2594_v62, %v2891_v43  ;;  %v2915_v9 = vld [vmem:[#allocation2 + $0x149] sm:$0xff]  ;;  %v1304_v8 = vld [vmem:[#allocation2 + $0x111] sm:$0xff] }
  0xbb   : > { %v956_v61 = vadd.f32 1.0, %v1879_v16  ;;  %v895_v56 = vmul.f32 %v879_v3, %v831_v46  ;;  %v864_v15 = vmul.f32 0.044715, %v832_v35  ;;  %v775_v50 = vadd.f32 %v759_v60, %v739_v14  ;;  %v3438_v14 = vld [vmem:[#allocation51_spill] sm:$0xff]  ;;  %v3439_v49 = vld [vmem:[#allocation52_spill] sm:$0xff] }
  0xbc   : > { %1062 = vst.msk [vmem:[%s2776_s13 + $0x40] sm:$0xff] %vm315_vm0, %v1046_v24  ;;  %v1015_v31 = vadd.f32 %v2759_v54, %v993_v57  ;;  %v2904_v19 = vmul.f32 0.5, %v830_v45  ;;  %v926_v10 = vmul.f32 0.7978846, %v910_v47  ;;  %v1223_v27 = vadd.f32 %v3436_v1, %v3435_v44  ;;  %v3440_v4 = vld [vmem:[#allocation40_spill] sm:$0xff]  ;;  %v3443_v44 = vld [vmem:[#allocation43_spill] sm:$0xff] }
  0xbd   : > { %v972_v26 = vmul.f32 %v956_v61, %v844_v12  ;;  %v911_v51 = vadd.f32 %v895_v56, %v831_v46  ;;  %v880_v30 = vmul.f32 %v864_v15, %v832_v35  ;;  %v811_v23 = vadd.f32 %v795_v17, %v775_v50  ;;  %v1032_v24 = vld [vmem:[#allocation2 + $0xc8] sm:$0xff]  ;;  %v2933_v56 = vld [vmem:[#allocation2 + $0x151] sm:$0xff] }
  0xbe   : > { %v1047_v41 = vadd.f32 %v1031_v55, %v1015_v31  ;;  %1882 = vtanh.f32 %v926_v10  ;;  %v2908_v18 = vmul.f32 0.5, %v831_v46  ;;  %v1255_v6 = vadd.f32 %v3437_v53, %v1223_v27  ;;  %v3441_v61 = vld [vmem:[#allocation48_spill] sm:$0xff]  ;;  %v3442_v10 = vld [vmem:[#allocation53_spill] sm:$0xff]  ;;  %v3445_v53 = vld [vmem:[#allocation50_spill] sm:$0xff] }
  0xbf   : > { %v994_v28 = vmul.f32 %v2746_v42, %v972_v26  ;;  %v927_v45 = vmul.f32 0.7978846, %v911_v51  ;;  %v896_v40 = vmul.f32 %v880_v30, %v832_v35  ;;  %v2913_v25 = vadd.f32 %v2654_v37, %v811_v23  ;;  %v3444_v51 = vld [vmem:[#allocation56_spill] sm:$0xff] }
  0xc0   : > { %1063 = vst.msk [vmem:[%s2776_s13 + $0x48] sm:$0xff] %vm315_vm0, %v1047_v41  ;;  %v2919_v12 = vmul.f32 0.5, %v832_v35  ;;  %v1287_v22 = vadd.f32 %v3438_v14, %v1255_v6  ;;  %v1323_v46 = vmul.f32 %v2832_v2, %v2100_v32  ;;  %v1224_v38 = vadd.f32 %v3440_v4, %v3439_v49  ;;  %v2948_v14 = vld [vmem:[#allocation2 + $0x169] sm:$0xff] }
  0xc1   : > { %v1016_v3 = vadd.f32 %v2759_v54, %v994_v28  ;;  %1884 = vtanh.f32 %v927_v45  ;;  %v912_v60 = vadd.f32 %v896_v40, %v832_v35  ;;  %v1355_v16 = vmul.f32 %v2127_v48, %v2867_v13 }
  0xc2   : > { %v865_v57 = vmul.f32 0.044715, %v2913_v25  ;;  %v1339_v47 = vadd.f32 %v1323_v46, %v1287_v22  ;;  %v1387_v17 = vmul.f32 %v2594_v62, %v2915_v9  ;;  %v1256_v2 = vadd.f32 %v3441_v61, %v1224_v38  ;;  %v3446_v22 = vld [vmem:[#allocation59_spill] sm:$0xff]  ;;  %v3447_v38 = vld [vmem:[#allocation60_spill] sm:$0xff] }
  0xc3   : > { %v1881_v15 = vpop.eup %1880  ;;  %v1048_v50 = vadd.f32 %v1032_v24, %v1016_v3  ;;  %v928_v31 = vmul.f32 0.7978846, %v912_v60  ;;  %v1324_v35 = vmul.f32 %v1304_v8, %v2100_v32  ;;  %v1225_v1 = vadd.f32 %v3443_v44, %v3442_v10  ;;  %v3448_v3 = vld [vmem:[#allocation47_spill] sm:$0xff] }
  0xc4   : > { %v957_v27 = vadd.f32 1.0, %v1881_v15  ;;  %v881_v55 = vmul.f32 %v865_v57, %v2913_v25  ;;  %v1371_v26 = vadd.f32 %v1355_v16, %v1339_v47  ;;  %v1288_v30 = vadd.f32 %v3444_v51, %v1256_v2  ;;  %v3450_v51 = vld [vmem:[#allocation64_spill] sm:$0xff] }
  0xc5   : > { %1064 = vst.msk [vmem:[%s2776_s13 + $0x50] sm:$0xff] %vm315_vm0, %v1048_v50  ;;  %1886 = vtanh.f32 %v928_v31  ;;  %v1356_v23 = vmul.f32 %v2127_v48, %v2891_v43  ;;  %v1388_v41 = vmul.f32 %v2594_v62, %v2933_v56  ;;  %v1257_v6 = vadd.f32 %v3445_v53, %v1225_v1  ;;  %v1033_v1 = vld [vmem:[#allocation2 + $0xd0] sm:$0xff] }
  0xc6   : > { %v973_v28 = vmul.f32 %v957_v27, %v845_v7  ;;  %v897_v45 = vmul.f32 %v881_v55, %v2913_v25  ;;  %v1403_v40 = vadd.f32 %v1387_v17, %v1371_v26  ;;  %v1340_v8 = vadd.f32 %v1324_v35, %v1288_v30 }
  0xc7   : > { %v1289_v46 = vadd.f32 %v3446_v22, %v1257_v6  ;;  %v1325_v49 = vmul.f32 %v2100_v32, %v2867_v13  ;;  %v1357_v4 = vmul.f32 %v2915_v9, %v2127_v48  ;;  %v1226_v60 = vadd.f32 %v3448_v3, %v3447_v38  ;;  %v3449_v13 = vld [vmem:[#allocation55_spill] sm:$0xff] }
  0xc8   : > { %v1883_v16 = vpop.eup %1882  ;;  %v995_v7 = vmul.f32 %v2746_v42, %v973_v28  ;;  %v913_v24 = vadd.f32 %v897_v45, %v2913_v25  ;;  %v1419_v57 = vadd.f32 %v2654_v37, %v1403_v40  ;;  %v1372_v47 = vadd.f32 %v1356_v23, %v1340_v8  ;;  %v2968_v28 = vld [vmem:[#allocation2 + $0x171] sm:$0xff] }
  0xc9   : > { %v958_v17 = vadd.f32 1.0, %v1883_v16  ;;  %v1341_v61 = vadd.f32 %v1325_v49, %v1289_v46  ;;  %v1389_v2 = vmul.f32 %v2594_v62, %v2948_v14  ;;  %v1258_v15 = vadd.f32 %v3449_v13, %v1226_v60  ;;  %v3451_v46 = vld [vmem:[#allocation61_spill] sm:$0xff] }
  0xca   : > { %v1017_v50 = vadd.f32 %v2759_v54, %v995_v7  ;;  %v929_v31 = vmul.f32 0.7978846, %v913_v24  ;;  %v1451_v35 = vmul.f32 0.044715, %v1419_v57  ;;  %v1326_v10 = vmul.f32 %v2100_v32, %v2891_v43  ;;  %v3452_v49 = vld [vmem:[#allocation49_spill] sm:$0xff]  ;;  %v1034_v24 = vld [vmem:[#allocation2 + $0xe8] sm:$0xff] }
  0xcb   : > { %v1885_v44 = vpop.eup %1884  ;;  %v974_v27 = vmul.f32 %v958_v17, %v2904_v19  ;;  %v1404_v55 = vadd.f32 %v1388_v41, %v1372_v47  ;;  %v1373_v26 = vadd.f32 %v1357_v4, %v1341_v61  ;;  %v1290_v30 = vadd.f32 %v3450_v51, %v1258_v15  ;;  %v3453_v51 = vld [vmem:[#allocation58_spill] sm:$0xff] }
  0xcc   : > { %v1049_v23 = vadd.f32 %v1033_v1, %v1017_v50  ;;  %v959_v53 = vadd.f32 1.0, %v1885_v44  ;;  %1888 = vtanh.f32 %v929_v31  ;;  %v1467_v6 = vmul.f32 %v1451_v35, %v1419_v57  ;;  %v1035_v1 = vld [vmem:[#allocation2 + $0xf0] sm:$0xff] }
  0xcd   : > { %v996_v45 = vmul.f32 %v2746_v42, %v974_v27  ;;  %v1420_v40 = vadd.f32 %v2654_v37, %v1404_v55  ;;  %v1405_v43 = vadd.f32 %v1389_v2, %v1373_v26  ;;  %v1342_v8 = vadd.f32 %v1326_v10, %v1290_v30 }
  0xce   : > { %1065 = vst.msk [vmem:[%s2776_s13 + $0x58] sm:$0xff] %vm315_vm0, %v1049_v23  ;;  %v975_v19 = vmul.f32 %v959_v53, %v2908_v18  ;;  %v1483_v41 = vmul.f32 %v1467_v6, %v1419_v57  ;;  %v1358_v22 = vmul.f32 %v2933_v56, %v2127_v48  ;;  %v1227_v4 = vadd.f32 %v3452_v49, %v3451_v46 }
  0xcf   : > { %v1887_v38 = vpop.eup %1886  ;;  %v1018_v3 = vadd.f32 %v2759_v54, %v996_v45  ;;  %v1452_v60 = vmul.f32 0.044715, %v1420_v40  ;;  %v1421_v16 = vadd.f32 %v2654_v37, %v1405_v43  ;;  %v1390_v7 = vmul.f32 %v2594_v62, %v2968_v28  ;;  %v3454_v45 = vld [vmem:[#allocation67_spill] sm:$0xff] }
  0xd0   : > { %v997_v18 = vmul.f32 %v2746_v42, %v975_v19  ;;  %v960_v47 = vadd.f32 1.0, %v1887_v38  ;;  %v1499_v17 = vadd.f32 %v1483_v41, %v1419_v57  ;;  %v1374_v61 = vadd.f32 %v1358_v22, %v1342_v8  ;;  %v2995_v8 = vld [vmem:[#allocation2 + $0x189] sm:$0xff] }
  0xd1   : > { %v1050_v2 = vadd.f32 %v1034_v24, %v1018_v3  ;;  %v849_v13 = vmul.f32 0.5, %v2913_v25  ;;  %v1468_v15 = vmul.f32 %v1452_v60, %v1420_v40  ;;  %v1453_v50 = vmul.f32 0.044715, %v1421_v16 }
  0xd2   : > { %v1019_v31 = vadd.f32 %v2759_v54, %v997_v18  ;;  %v976_v35 = vmul.f32 %v960_v47, %v2919_v12  ;;  %v1515_v10 = vmul.f32 0.7978846, %v1499_v17  ;;  %v1406_v44 = vadd.f32 %v1390_v7, %v1374_v61  ;;  %v3455_v47 = vld [vmem:[#allocation68_spill] sm:$0xff]  ;;  %v3456_v17 = vld [vmem:[#allocation54_spill] sm:$0xff] }
  0xd3   : > { %1066 = vst.msk [vmem:[%s2776_s13 + $0x60] sm:$0xff] %vm315_vm0, %v1050_v2  ;;  %v2989_v27 = vmul.f32 0.5, %v1419_v57  ;;  %v1484_v55 = vmul.f32 %v1468_v15, %v1420_v40  ;;  %v1469_v26 = vmul.f32 %v1453_v50, %v1421_v16  ;;  %v1259_v30 = vadd.f32 %v3453_v51, %v1227_v4  ;;  %v1036_v4 = vld [vmem:[#allocation2 + $0x108] sm:$0xff]  ;;  %v3458_v51 = vld [vmem:[#allocation69_spill] sm:$0xff] }
  0xd4   : > { %v1051_v23 = vadd.f32 %v1035_v1, %v1019_v31  ;;  %v998_v25 = vmul.f32 %v2746_v42, %v976_v35  ;;  %1890 = vtanh.f32 %v1515_v10  ;;  %v1422_v53 = vadd.f32 %v2654_v37, %v1406_v44  ;;  %v3457_v10 = vld [vmem:[#allocation63_spill] sm:$0xff]  ;;  %v3017_v1 = vld [vmem:[#allocation2 + $0x191] sm:$0xff] }
  0xd5   : > { %v1500_v6 = vadd.f32 %v1484_v55, %v1420_v40  ;;  %v1485_v12 = vmul.f32 %v1469_v26, %v1421_v16  ;;  %v1291_v43 = vadd.f32 %v3454_v45, %v1259_v30  ;;  %v1327_v57 = vmul.f32 %v2915_v9, %v2100_v32 }
  0xd6   : > { %v1889_v19 = vpop.eup %1888  ;;  %1067 = vst.msk [vmem:[%s2776_s13 + $0x68] sm:$0xff] %vm315_vm0, %v1051_v23  ;;  %v1020_v41 = vadd.f32 %v2759_v54, %v998_v25  ;;  %v3002_v22 = vmul.f32 0.5, %v1420_v40  ;;  %v1454_v46 = vmul.f32 0.044715, %v1422_v53  ;;  %v1359_v49 = vmul.f32 %v2948_v14, %v2127_v48  ;;  %v3460_v25 = vld [vmem:[#allocation72_spill] sm:$0xff] }
  0xd7   : > { %v961_v38 = vadd.f32 1.0, %v1889_v19  ;;  %v1516_v3 = vmul.f32 0.7978846, %v1500_v6  ;;  %v1501_v60 = vadd.f32 %v1485_v12, %v1421_v16  ;;  %v1343_v7 = vadd.f32 %v1327_v57, %v1291_v43  ;;  %v3461_v19 = vld [vmem:[#allocation66_spill] sm:$0xff] }
  0xd8   : > { %v1052_v24 = vadd.f32 %v1036_v4, %v1020_v41  ;;  %v1470_v18 = vmul.f32 %v1454_v46, %v1422_v53  ;;  %v1391_v9 = vmul.f32 %v2594_v62, %v2995_v8  ;;  %v1228_v61 = vadd.f32 %v3456_v17, %v3455_v47  ;;  %v3464_v17 = vld [vmem:[#allocation75_spill] sm:$0xff] }
  0xd9   : > { %v977_v40 = vmul.f32 %v961_v38, %v849_v13  ;;  %1892 = vtanh.f32 %v1516_v3  ;;  %v1517_v2 = vmul.f32 0.7978846, %v1501_v60  ;;  %v1375_v15 = vadd.f32 %v1359_v49, %v1343_v7  ;;  %v3459_v13 = vld [vmem:[#allocation57_spill] sm:$0xff]  ;;  %v3462_v3 = vld [vmem:[#allocation76_spill] sm:$0xff]  ;;  %v3463_v60 = vld [vmem:[#allocation62_spill] sm:$0xff] }
  0xda   : > { %1068 = vst.msk [vmem:[%s2776_s13 + $0x70] sm:$0xff] %vm315_vm0, %v1052_v24  ;;  %v3012_v50 = vmul.f32 0.5, %v1421_v16  ;;  %v3014_v31 = vmul.f32 0.5, %v1422_v53  ;;  %v1486_v35 = vmul.f32 %v1470_v18, %v1422_v53  ;;  %v1260_v44 = vadd.f32 %v3457_v10, %v1228_v61  ;;  %v3034_v38 = vld [vmem:[#allocation2 + $0x1a9] sm:$0xff]  ;;  %v3054_v10 = vld [vmem:[%s3307_s0 + $0x8] ss:$0 sm:$0xff] }
  0xdb   : > { %v999_v55 = vmul.f32 %v2746_v42, %v977_v40  ;;  %1894 = vtanh.f32 %v1517_v2  ;;  %v1407_v26 = vadd.f32 %v1391_v9, %v1375_v15  ;;  %v1229_v30 = vadd.f32 %v3459_v13, %v3458_v51  ;;  %v3465_v40 = vld [vmem:[#allocation71_spill] sm:$0xff]  ;;  %v3045_v15 = vld [vmem:[#allocation2 + $0x1b1] sm:$0xff]  ;;  %v3466_v13 = vld [vmem:[#allocation80_spill] sm:$0xff] }
  0xdc   : > { %v1502_v23 = vadd.f32 %v1486_v35, %v1422_v53  ;;  %v1292_v6 = vadd.f32 %v3460_v25, %v1260_v44  ;;  %v1328_v16 = vmul.f32 %v2933_v56, %v2100_v32  ;;  %v1360_v12 = vmul.f32 %v2968_v28, %v2127_v48  ;;  %v1037_v53 = vld [vmem:[#allocation2 + $0x110] sm:$0xff] }
  0xdd   : > { %v1021_v45 = vadd.f32 %v2759_v54, %v999_v55  ;;  %v3029_v43 = vadd.f32 %v2654_v37, %v1407_v26  ;;  %v1392_v57 = vmul.f32 %v2594_v62, %v3017_v1  ;;  %v1261_v41 = vadd.f32 %v3461_v19, %v1229_v30  ;;  %v3468_v25 = vld [vmem:[#allocation65_spill] sm:$0xff] }
  0xde   : > { %v1891_v46 = vpop.eup %1890  ;;  %v1518_v49 = vmul.f32 0.7978846, %v1502_v23  ;;  %v1344_v4 = vadd.f32 %v1328_v16, %v1292_v6  ;;  %v1329_v56 = vmul.f32 %v2948_v14, %v2100_v32  ;;  %v1230_v7 = vadd.f32 %v3463_v60, %v3462_v3  ;;  %v3467_v23 = vld [vmem:[#allocation77_spill] sm:$0xff] }
  0xdf   : > { %v1053_v24 = vadd.f32 %v1037_v53, %v1021_v45  ;;  %v1547_v18 = vadd.f32 1.0, %v1891_v46  ;;  %v1455_v9 = vmul.f32 0.044715, %v3029_v43  ;;  %v1361_v62 = vmul.f32 %v2995_v8, %v2127_v48 }
  0xe0   : > { %1896 = vtanh.f32 %v1518_v49  ;;  %v1376_v47 = vadd.f32 %v1360_v12, %v1344_v4  ;;  %v1293_v61 = vadd.f32 %v3464_v17, %v1261_v41  ;;  %v1262_v2 = vadd.f32 %v3465_v40, %v1230_v7  ;;  %v1612_v7 = vld [vmem:[#allocation2 + $0x128] sm:$0xff] }
  0xe1   : > { %1069 = vst.msk [vmem:[%s2776_s13 + $0x78] sm:$0xff] %vm315_vm0, %v1053_v24  ;;  %v1563_v14 = vmul.f32 %v1547_v18, %v2989_v27  ;;  %v1471_v35 = vmul.f32 %v1455_v9, %v3029_v43  ;;  %v1393_v44 = vmul.f32 %v3054_v10, %v3034_v38  ;;  %v1330_v55 = vmul.f32 %v2968_v28, %v2100_v32 }
  0xe2   : > { %v1408_v26 = vadd.f32 %v1392_v57, %v1376_v47  ;;  %v1345_v51 = vadd.f32 %v1329_v56, %v1293_v61  ;;  %v1294_v30 = vadd.f32 %v3466_v13, %v1262_v2  ;;  %v1231_v27 = vadd.f32 %v3468_v25, %v3467_v23  ;;  %v3469_v56 = vld [vmem:[#allocation74_spill] sm:$0xff]  ;;  %v1613_v25 = vld [vmem:[#allocation2 + $0x130] sm:$0xff] }
  0xe3   : > { %v1893_v6 = vpop.eup %1892  ;;  %v1579_v16 = vmul.f32 %v2746_v42, %v1563_v14  ;;  %v1487_v12 = vmul.f32 %v1471_v35, %v3029_v43  ;;  %v1362_v45 = vmul.f32 %v3017_v1, %v2127_v48  ;;  %v1394_v19 = vmul.f32 %v3054_v10, %v3045_v15 }
  0xe4   : > { %v1548_v41 = vadd.f32 1.0, %v1893_v6  ;;  %v1424_v28 = vadd.f32 %v2654_v37, %v1408_v26  ;;  %v1377_v57 = vadd.f32 %v1361_v62, %v1345_v51  ;;  %v1346_v46 = vadd.f32 %v1330_v55, %v1294_v30  ;;  %v3470_v26 = vld [vmem:[#allocation70_spill] sm:$0xff] }
  0xe5   : > { %v1895_v53 = vpop.eup %1894  ;;  %v1595_v49 = vadd.f32 %v2759_v54, %v1579_v16  ;;  %v1503_v4 = vadd.f32 %v1487_v12, %v3029_v43  ;;  %v1263_v3 = vadd.f32 %v3469_v56, %v1231_v27  ;;  %v1331_v60 = vmul.f32 %v2995_v8, %v2100_v32  ;;  %v3081_v8 = vld [vmem:[#allocation2 + $0x1c9] sm:$0xff] }
  0xe6   : > { %v1564_v24 = vmul.f32 %v1548_v41, %v3002_v22  ;;  %v1549_v18 = vadd.f32 1.0, %v1895_v53  ;;  %v1456_v9 = vmul.f32 0.044715, %v1424_v28  ;;  %v1363_v37 = vmul.f32 %v3034_v38, %v2127_v48  ;;  %v3088_v22 = vld [vmem:[%s3308_s1] ss:$0 sm:$0xff] }
  0xe7   : > { %v1628_v62 = vadd.f32 %v1612_v7, %v1595_v49  ;;  %v1519_v47 = vmul.f32 0.7978846, %v1503_v4  ;;  %v1409_v17 = vadd.f32 %v1393_v44, %v1377_v57  ;;  %v1378_v61 = vadd.f32 %v1362_v45, %v1346_v46  ;;  %v1614_v57 = vld [vmem:[#allocation2 + $0x148] sm:$0xff]  ;;  %v3471_v7 = vld [vmem:[#allocation79_spill] sm:$0xff] }
  0xe8   : > { %v1580_v40 = vmul.f32 %v2746_v42, %v1564_v24  ;;  %v1565_v2 = vmul.f32 %v1549_v18, %v3012_v50  ;;  %v1472_v14 = vmul.f32 %v1456_v9, %v1424_v28  ;;  %v1295_v35 = vadd.f32 %v2555_v59, %v1263_v3 }
  0xe9   : > { %1813 = vst.msk [vmem:[%s2776_s13 + $0x80] sm:$0xff] %vm315_vm0, %v1628_v62  ;;  %1898 = vtanh.f32 %v1519_v47  ;;  %v1425_v44 = vadd.f32 %v3088_v22, %v1409_v17  ;;  %v1410_v55 = vadd.f32 %v1394_v19, %v1378_v61  ;;  %v1232_v51 = vadd.f32 %v3470_v26, %v2557_v36  ;;  %v3111_v47 = vld [vmem:[#allocation2 + $0x1d1] sm:$0xff] }
  0xea   : > { %v1897_v50 = vpop.eup %1896  ;;  %v1596_v13 = vadd.f32 %v2759_v54, %v1580_v40  ;;  %v1581_v59 = vmul.f32 %v2746_v42, %v1565_v2  ;;  %v1488_v30 = vmul.f32 %v1472_v14, %v1424_v28  ;;  %v1347_v23 = vadd.f32 %v1331_v60, %v1295_v35  ;;  %v1615_v14 = vld [vmem:[#allocation2 + $0x150] sm:$0xff] }
  0xeb   : > { %v1550_v27 = vadd.f32 1.0, %v1897_v50  ;;  %v1457_v6 = vmul.f32 0.044715, %v1425_v44  ;;  %v1426_v16 = vadd.f32 %v3088_v22, %v1410_v55  ;;  %v1395_v12 = vmul.f32 %v3054_v10, %v3081_v8 }
  0xec   : > { %v1629_v45 = vadd.f32 %v1613_v25, %v1596_v13  ;;  %v1597_v19 = vadd.f32 %v2759_v54, %v1581_v59  ;;  %v1504_v36 = vadd.f32 %v1488_v30, %v1424_v28  ;;  %v1379_v41 = vadd.f32 %v1363_v37, %v1347_v23 }
  0xed   : > { %v1566_v46 = vmul.f32 %v1550_v27, %v3014_v31  ;;  %v1439_v53 = vmul.f32 0.5, %v3029_v43  ;;  %v1473_v49 = vmul.f32 %v1457_v6, %v1425_v44  ;;  %v1458_v4 = vmul.f32 0.044715, %v1426_v16  ;;  %v3474_v6 = vld [vmem:[#allocation82_spill] sm:$0xff] }
  0xee   : > { %1814 = vst.msk [vmem:[%s2776_s13 + $0x88] sm:$0xff] %vm315_vm0, %v1629_v45  ;;  %v1630_v56 = vadd.f32 %v1614_v57, %v1597_v19  ;;  %v1520_v3 = vmul.f32 0.7978846, %v1504_v36  ;;  %v1411_v60 = vadd.f32 %v1395_v12, %v1379_v41  ;;  %v1264_v24 = vadd.f32 %v3471_v7, %v1232_v51  ;;  %v3472_v51 = vld [vmem:[#allocation83_spill] sm:$0xff] }
  0xef   : > { %v1582_v18 = vmul.f32 %v2746_v42, %v1566_v46  ;;  %v3105_v9 = vmul.f32 0.5, %v1424_v28  ;;  %v1489_v62 = vmul.f32 %v1473_v49, %v1425_v44  ;;  %v1474_v37 = vmul.f32 %v1458_v4, %v1426_v16  ;;  %v3132_v4 = vld [vmem:[#allocation2 + $0x1e9] sm:$0xff] }
  0xf0   : > { %1815 = vst.msk [vmem:[%s2776_s13 + $0x90] sm:$0xff] %vm315_vm0, %v1630_v56  ;;  %1900 = vtanh.f32 %v1520_v3  ;;  %v1427_v31 = vadd.f32 %v3088_v22, %v1411_v60  ;;  %v1296_v43 = vadd.f32 %v2572_v58, %v1264_v24  ;;  %v1332_v17 = vmul.f32 %v3017_v1, %v2100_v32  ;;  %v3473_v58 = vld [vmem:[#allocation73_spill] sm:$0xff] }
  0xf1   : > { %v1598_v61 = vadd.f32 %v2759_v54, %v1582_v18  ;;  %v3116_v40 = vmul.f32 0.5, %v1425_v44  ;;  %v1505_v28 = vadd.f32 %v1489_v62, %v1425_v44  ;;  %v1490_v2 = vmul.f32 %v1474_v37, %v1426_v16  ;;  %v3476_v18 = vld [vmem:[#allocation85_spill] sm:$0xff] }
  0xf2   : > { %v1459_v35 = vmul.f32 0.044715, %v1427_v31  ;;  %v1348_v55 = vadd.f32 %v1332_v17, %v1296_v43  ;;  %v1364_v26 = vmul.f32 %v3045_v15, %v2127_v48  ;;  %v1233_v50 = vadd.f32 %v3473_v58, %v3472_v51  ;;  %v3477_v43 = vld [vmem:[#allocation81_spill] sm:$0xff] }
  0xf3   : > { %v1899_v13 = vpop.eup %1898  ;;  %v1631_v59 = vadd.f32 %v1615_v14, %v1598_v61  ;;  %v1521_v30 = vmul.f32 0.7978846, %v1505_v28  ;;  %v1506_v1 = vadd.f32 %v1490_v2, %v1426_v16  ;;  %v1396_v23 = vmul.f32 %v3054_v10, %v3111_v47  ;;  %v1616_v14 = vld [vmem:[#allocation2 + $0x168] sm:$0xff]  ;;  %v3156_v51 = vld [vmem:[#allocation2 + $0x1f1] sm:$0xff] }
  0xf4   : > { %v1551_v25 = vadd.f32 1.0, %v1899_v13  ;;  %v1475_v44 = vmul.f32 %v1459_v35, %v1427_v31  ;;  %v1380_v27 = vadd.f32 %v1364_v26, %v1348_v55  ;;  %v1265_v12 = vadd.f32 %v3474_v6, %v1233_v50 }
  0xf5   : > { %1816 = vst.msk [vmem:[%s2776_s13 + $0x98] sm:$0xff] %vm315_vm0, %v1631_v59  ;;  %1902 = vtanh.f32 %v1521_v30  ;;  %v3127_v45 = vmul.f32 0.5, %v1426_v16  ;;  %v1522_v19 = vmul.f32 0.7978846, %v1506_v1  ;;  %v1333_v36 = vmul.f32 %v3034_v38, %v2100_v32  ;;  %v3475_v16 = vld [vmem:[#allocation78_spill] sm:$0xff] }
  0xf6   : > { %v1567_v41 = vmul.f32 %v1551_v25, %v1439_v53  ;;  %v1491_v57 = vmul.f32 %v1475_v44, %v1427_v31  ;;  %v1412_v46 = vadd.f32 %v1396_v23, %v1380_v27  ;;  %v1297_v49 = vadd.f32 %v2584_v33, %v1265_v12  ;;  %v3164_v23 = vld [vmem:[#allocation2 + $0x209] sm:$0xff] }
  0xf7   : > { %1904 = vtanh.f32 %v1522_v19  ;;  %v3134_v56 = vmul.f32 0.5, %v1427_v31  ;;  %v1365_v3 = vmul.f32 %v3081_v8, %v2127_v48  ;;  %v1234_v60 = vadd.f32 %v3475_v16, %v2579_v21  ;;  %v1617_v16 = vld [vmem:[#allocation2 + $0x170] sm:$0xff] }
  0xf8   : > { %v1583_v7 = vmul.f32 %v2746_v42, %v1567_v41  ;;  %v1507_v24 = vadd.f32 %v1491_v57, %v1427_v31  ;;  %v3142_v38 = vadd.f32 %v3088_v22, %v1412_v46  ;;  %v1349_v53 = vadd.f32 %v1333_v36, %v1297_v49 }
  0xf9   : > { %v1397_v33 = vmul.f32 %v3054_v10, %v3132_v4  ;;  %v1266_v62 = vadd.f32 %v3476_v18, %v1234_v60  ;;  %v1334_v37 = vmul.f32 %v3045_v15, %v2100_v32  ;;  %v1235_v17 = vadd.f32 %v3477_v43, %v2589_v39 }
  0xfa   : > { %v1901_v61 = vpop.eup %1900  ;;  %v1599_v21 = vadd.f32 %v2759_v54, %v1583_v7  ;;  %v1523_v28 = vmul.f32 0.7978846, %v1507_v24  ;;  %v1460_v31 = vmul.f32 0.044715, %v3142_v38  ;;  %v1366_v2 = vmul.f32 %v3111_v47, %v2127_v48 }
  0xfb   : > { %v1552_v35 = vadd.f32 1.0, %v1901_v61  ;;  %v1381_v55 = vadd.f32 %v1365_v3, %v1349_v53  ;;  %v1298_v26 = vadd.f32 %v2597_v29, %v1266_v62  ;;  %v1267_v15 = vadd.f32 %v2577_v11, %v1235_v17  ;;  %v3193_v62 = vld [vmem:[#allocation2 + $0x211] sm:$0xff] }
  0xfc   : > { %v1632_v39 = vadd.f32 %v1616_v14, %v1599_v21  ;;  %1906 = vtanh.f32 %v1523_v28  ;;  %v1476_v58 = vmul.f32 %v1460_v31, %v3142_v38  ;;  %v1335_v50 = vmul.f32 %v3081_v8, %v2100_v32  ;;  %v3478_v8 = vld [vmem:[#allocation84_spill] sm:$0xff]  ;;  %v3211_v31 = vld [vmem:[%s3310_s3] ss:$0 sm:$0xff] }
  0xfd   : > { %v1568_v13 = vmul.f32 %v1552_v35, %v3105_v9  ;;  %v1413_v59 = vadd.f32 %v1397_v33, %v1381_v55  ;;  %v1350_v30 = vadd.f32 %v1334_v37, %v1298_v26  ;;  %v1299_v1 = vadd.f32 %v2604_v63, %v1267_v15  ;;  %v1618_v55 = vld [vmem:[#allocation2 + $0x188] sm:$0xff] }
  0xfe   : > { %1817 = vst.msk [vmem:[%s2776_s13 + $0xa0] sm:$0xff] %vm315_vm0, %v1632_v39  ;;  %v1492_v29 = vmul.f32 %v1476_v58, %v3142_v38  ;;  %v1398_v11 = vmul.f32 %v3054_v10, %v3156_v51  ;;  %v1367_v25 = vmul.f32 %v3132_v4, %v2127_v48  ;;  %v1236_v44 = vadd.f32 %v3478_v8, %v2599_v5 }
  0xff   : > { %v1903_v9 = vpop.eup %1902  ;;  %v1584_v27 = vmul.f32 %v2746_v42, %v1568_v13  ;;  %v3177_v63 = vadd.f32 %v3088_v22, %v1413_v59  ;;  %v1382_v6 = vadd.f32 %v1366_v2, %v1350_v30  ;;  %v1351_v12 = vadd.f32 %v1335_v50, %v1299_v1  ;;  %v1934_v50 = vld [vmem:[#allocation2 + $0x1e8] sm:$0xff]  ;;  %v3479_v13 = vld [vmem:[#allocation3_spill] sm:$0xff] }
 0x100   : > { %v1553_v19 = vadd.f32 1.0, %v1903_v9  ;;  %v1508_v36 = vadd.f32 %v1492_v29, %v3142_v38  ;;  %v1399_v41 = vmul.f32 %v3054_v10, %v3164_v23  ;;  %v1268_v57 = vadd.f32 %v2587_v52, %v1236_v44 }
 0x101   : > { %v1905_v46 = vpop.eup %1904  ;;  %v1600_v49 = vadd.f32 %v2759_v54, %v1584_v27  ;;  %v1461_v5 = vmul.f32 0.044715, %v3177_v63  ;;  %v1414_v3 = vadd.f32 %v1398_v11, %v1382_v6  ;;  %v1336_v42 = vmul.f32 %v3111_v47, %v2100_v32  ;;  %v3198_v47 = vld [vmem:[%s3309_s2] ss:$0 sm:$0xff]  ;;  %v1619_v11 = vld [vmem:[#allocation2 + $0x190] sm:$0xff]  ;;  %v1935_v27 = vld [vmem:[#allocation2 + $0x208] sm:$0xff] }
 0x102   : > { %v1569_v60 = vmul.f32 %v1553_v19, %v3116_v40  ;;  %v1554_v7 = vadd.f32 1.0, %v1905_v46  ;;  %v1524_v24 = vmul.f32 0.7978846, %v1508_v36  ;;  %v1383_v53 = vadd.f32 %v1367_v25, %v1351_v12  ;;  %v3480_v6 = vld [vmem:[#allocation4_spill] sm:$0xff] }
 0x103   : > { %v1633_v33 = vadd.f32 %v1617_v16, %v1600_v49  ;;  %v1477_v18 = vmul.f32 %v1461_v5, %v3177_v63  ;;  %v3190_v52 = vadd.f32 %v3088_v22, %v1414_v3  ;;  %v1300_v54 = vadd.f32 %v2610_v34, %v1268_v57  ;;  %v1936_v49 = vld [vmem:[#allocation2 + $0x1f0] sm:$0xff] }
 0x104   : > { %v1585_v40 = vmul.f32 %v3198_v47, %v1569_v60  ;;  %v1570_v37 = vmul.f32 %v1554_v7, %v3127_v45  ;;  %1908 = vtanh.f32 %v1524_v24  ;;  %v1415_v43 = vadd.f32 %v1399_v41, %v1383_v53  ;;  %v1937_v3 = vld [vmem:[#allocation2 + $0x210] sm:$0xff] }
 0x105   : > { %1818 = vst.msk [vmem:[%s2776_s13 + $0xa8] sm:$0xff] %vm315_vm0, %v1633_v33  ;;  %v1493_v17 = vmul.f32 %v1477_v18, %v3177_v63  ;;  %v1462_v61 = vmul.f32 0.044715, %v3190_v52  ;;  %v1352_v34 = vadd.f32 %v1336_v42, %v1300_v54  ;;  %v1368_v21 = vmul.f32 %v3156_v51, %v2127_v48  ;;  %v1620_v18 = vld [vmem:[#allocation2 + $0x1a8] sm:$0xff] }
 0x106   : > { %v1907_v28 = vpop.eup %1906  ;;  %v1601_v45 = vadd.f32 %v3211_v31, %v1585_v40  ;;  %v1586_v2 = vmul.f32 %v3198_v47, %v1570_v37  ;;  %v3216_v14 = vadd.f32 %v3088_v22, %v1415_v43  ;;  %v1400_v35 = vmul.f32 %v3054_v10, %v3193_v62  ;;  %v3481_v40 = vld [vmem:[#allocation5_spill] sm:$0xff] }
 0x107   : > { %v1555_v26 = vadd.f32 1.0, %v1907_v28  ;;  %v1509_v15 = vadd.f32 %v1493_v17, %v3177_v63  ;;  %v1478_v39 = vmul.f32 %v1462_v61, %v3190_v52  ;;  %v1384_v58 = vadd.f32 %v1368_v21, %v1352_v34  ;;  %v1321_v43 = vld [vmem:[#allocation2 + $0x229] sm:$0xff] }
 0x108   : > { %v1221_v59 = vmul.f32 %v1934_v50, %v3479_v13  ;;  %v1634_v30 = vadd.f32 %v1618_v55, %v1601_v45  ;;  %v1602_v1 = vadd.f32 %v3211_v31, %v1586_v2  ;;  %v1463_v29 = vmul.f32 0.044715, %v3216_v14 }
 0x109   : > { %v1571_v25 = vmul.f32 %v1555_v26, %v3134_v56  ;;  %v1525_v8 = vmul.f32 0.7978846, %v1509_v15  ;;  %v1494_v44 = vmul.f32 %v1478_v39, %v3190_v52  ;;  %v1416_v9 = vadd.f32 %v1400_v35, %v1384_v58  ;;  %v3482_v15 = vld [vmem:[#allocation6_spill] sm:$0xff] }
 0x10a   : > { %v1253_v12 = vmul.f32 %v1935_v27, %v3480_v6  ;;  %1819 = vst.msk [vmem:[%s2776_s13 + $0xb0] sm:$0xff] %vm315_vm0, %v1634_v30  ;;  %v1635_v19 = vadd.f32 %v1619_v11, %v1602_v1  ;;  %v1479_v36 = vmul.f32 %v1463_v29, %v3216_v14  ;;  %v1237_v41 = vadd.f32 %v1221_v59, %v2607_v0 }
 0x10b   : > { %v1587_v57 = vmul.f32 %v3198_v47, %v1571_v25  ;;  %1910 = vtanh.f32 %v1525_v8  ;;  %v1510_v56 = vadd.f32 %v1494_v44, %v3190_v52  ;;  %v3235_v46 = vadd.f32 %v3088_v22, %v1416_v9  ;;  %v1621_v44 = vld [vmem:[#allocation2 + $0x1b0] sm:$0xff] }
 0x10c   : > { %v1222_v5 = vmul.f32 %v1936_v49, %v3479_v13  ;;  %v1254_v42 = vmul.f32 %v1937_v3, %v3480_v6  ;;  %1820 = vst.msk [vmem:[%s2776_s13 + $0xb8] sm:$0xff] %vm315_vm0, %v1635_v19  ;;  %v1495_v16 = vmul.f32 %v1479_v36, %v3216_v14  ;;  %v1269_v60 = vadd.f32 %v1253_v12, %v1237_v41 }
 0x10d   : > { %v1603_v0 = vadd.f32 %v3211_v31, %v1587_v57  ;;  %v1444_v7 = vmul.f32 0.5, %v3142_v38  ;;  %v1526_v24 = vmul.f32 0.7978846, %v1510_v56  ;;  %v1464_v53 = vmul.f32 0.044715, %v3235_v46 }
 0x10e   : > { %v1909_v33 = vpop.eup %1908  ;;  %v1511_v54 = vadd.f32 %v1495_v16, %v3216_v14  ;;  %v1301_v37 = vadd.f32 %v3481_v40, %v1269_v60  ;;  %v1337_v17 = vmul.f32 %v3132_v4, %v2100_v32  ;;  %v1238_v61 = vadd.f32 %v1222_v5, %v2615_v20  ;;  %v1623_v40 = vld [vmem:[#allocation2 + $0x1d0] sm:$0xff] }
 0x10f   : > { %v1636_v34 = vadd.f32 %v1620_v18, %v1603_v0  ;;  %v1556_v21 = vadd.f32 1.0, %v1909_v33  ;;  %1912 = vtanh.f32 %v1526_v24  ;;  %v1480_v38 = vmul.f32 %v1464_v53, %v3235_v46 }
 0x110   : > { %v1527_v28 = vmul.f32 0.7978846, %v1511_v54  ;;  %v1353_v45 = vadd.f32 %v1337_v17, %v1301_v37  ;;  %v1369_v2 = vmul.f32 %v3164_v23, %v2127_v48  ;;  %v1270_v35 = vadd.f32 %v1254_v42, %v1238_v61  ;;  %v1322_v23 = vld [vmem:[#allocation2 + $0x231] sm:$0xff]  ;;  %v1622_v42 = vld [vmem:[#allocation2 + $0x1c8] sm:$0xff] }
 0x111   : > { %1821 = vst.msk [vmem:[%s2776_s13 + $0xc0] sm:$0xff] %vm315_vm0, %v1636_v34  ;;  %v1572_v55 = vmul.f32 %v1556_v21, %v1444_v7  ;;  %v1496_v26 = vmul.f32 %v1480_v38, %v3235_v46  ;;  %v1401_v4 = vmul.f32 %v3054_v10, %v1321_v43  ;;  %v1338_v58 = vmul.f32 %v3156_v51, %v2100_v32  ;;  %v1624_v38 = vld [vmem:[#allocation2 + $0x1e8] sm:$0xff] }
 0x112   : > { %1914 = vtanh.f32 %v1527_v28  ;;  %v1385_v20 = vadd.f32 %v1369_v2, %v1353_v45  ;;  %v1302_v39 = vadd.f32 %v3482_v15, %v1270_v35  ;;  %v1370_v1 = vmul.f32 %v3193_v62, %v2127_v48 }
 0x113   : > { %v1588_v50 = vmul.f32 %v3198_v47, %v1572_v55  ;;  %v1512_v13 = vadd.f32 %v1496_v26, %v3235_v46  ;;  %v1445_v25 = vmul.f32 0.5, %v3177_v63  ;;  %v1402_v27 = vmul.f32 %v3054_v10, %v1322_v23 }
 0x114   : > { %v1417_v59 = vadd.f32 %v1401_v4, %v1385_v20  ;;  %v1354_v30 = vadd.f32 %v1338_v58, %v1302_v39  ;;  %v1446_v62 = vmul.f32 0.5, %v3190_v52  ;;  %v1447_v16 = vmul.f32 0.5, %v3216_v14 }
 0x115   : > { %v1911_v29 = vpop.eup %1910  ;;  %v1604_v11 = vadd.f32 %v3211_v31, %v1588_v50  ;;  %v1528_v8 = vmul.f32 0.7978846, %v1512_v13  ;;  %v1448_v17 = vmul.f32 0.5, %v3235_v46  ;;  %v1625_v46 = vld [vmem:[#allocation2 + $0x1f0] sm:$0xff] }
 0x116   : > { %v1557_v9 = vadd.f32 1.0, %v1911_v29  ;;  %v1433_v32 = vadd.f32 %v3088_v22, %v1417_v59  ;;  %v1386_v51 = vadd.f32 %v1370_v1, %v1354_v30  ;;  %v1626_v30 = vld [vmem:[#allocation2 + $0x208] sm:$0xff] }
 0x117   : > { %v1637_v6 = vadd.f32 %v1621_v44, %v1604_v11  ;;  %1916 = vtanh.f32 %v1528_v8  ;;  %v1627_v8 = vld [vmem:[#allocation2 + $0x210] sm:$0xff] }
 0x118   : > { %v1573_v12 = vmul.f32 %v1557_v9, %v1445_v25  ;;  %v1465_v19 = vmul.f32 0.044715, %v1433_v32  ;;  %v1418_v36 = vadd.f32 %v1402_v27, %v1386_v51  ;;  %v1449_v20 = vmul.f32 0.5, %v1433_v32 }
 0x119   : > { %v1913_v48 = vpop.eup %1912  ;;  %1822 = vst.msk [vmem:[%s2776_s13 + $0xc8] sm:$0xff] %vm315_vm0, %v1637_v6 }
 0x11a   : > { %v1589_v63 = vmul.f32 %v3198_v47, %v1573_v12  ;;  %v1558_v41 = vadd.f32 1.0, %v1913_v48  ;;  %v1481_v57 = vmul.f32 %v1465_v19, %v1433_v32  ;;  %v1434_v56 = vadd.f32 %v3088_v22, %v1418_v36 }
 0x11c   : > { %v1915_v49 = vpop.eup %1914  ;;  %v1605_v10 = vadd.f32 %v3211_v31, %v1589_v63  ;;  %v1574_v5 = vmul.f32 %v1558_v41, %v1446_v62  ;;  %v1497_v3 = vmul.f32 %v1481_v57, %v1433_v32  ;;  %v1466_v0 = vmul.f32 0.044715, %v1434_v56 }
 0x11d   : > { %v1559_v60 = vadd.f32 1.0, %v1915_v49  ;;  %v1450_v13 = vmul.f32 0.5, %v1434_v56 }
 0x11e   : > { %v1638_v7 = vadd.f32 %v1622_v42, %v1605_v10  ;;  %v1590_v52 = vmul.f32 %v3198_v47, %v1574_v5  ;;  %v1513_v24 = vadd.f32 %v1497_v3, %v1433_v32  ;;  %v1482_v33 = vmul.f32 %v1466_v0, %v1434_v56 }
 0x11f   : > { %v1575_v53 = vmul.f32 %v1559_v60, %v1447_v16 }
 0x120   : > { %1823 = vst.msk [vmem:[%s2776_s13 + $0xd0] sm:$0xff] %vm315_vm0, %v1638_v7  ;;  %v1606_v22 = vadd.f32 %v3211_v31, %v1590_v52  ;;  %v1529_v18 = vmul.f32 0.7978846, %v1513_v24  ;;  %v1498_v14 = vmul.f32 %v1482_v33, %v1434_v56 }
 0x121   : > { %v1917_v54 = vpop.eup %1916  ;;  %v1591_v37 = vmul.f32 %v3198_v47, %v1575_v53 }
 0x122   : > { %v1639_v43 = vadd.f32 %v1623_v40, %v1606_v22  ;;  %v1560_v61 = vadd.f32 1.0, %v1917_v54  ;;  %1918 = vtanh.f32 %v1529_v18  ;;  %v1514_v21 = vadd.f32 %v1498_v14, %v1434_v56 }
 0x123   : > { %v1607_v34 = vadd.f32 %v3211_v31, %v1591_v37 }
 0x124   : > { %1824 = vst.msk [vmem:[%s2776_s13 + $0xd8] sm:$0xff] %vm315_vm0, %v1639_v43  ;;  %v1576_v28 = vmul.f32 %v1560_v61, %v1448_v17  ;;  %v1530_v2 = vmul.f32 0.7978846, %v1514_v21 }
 0x125   : > { %v1640_v45 = vadd.f32 %v1624_v38, %v1607_v34 }
 0x126   : > { %v1592_v35 = vmul.f32 %v3198_v47, %v1576_v28  ;;  %1920 = vtanh.f32 %v1530_v2 }
 0x127   : > { %1825 = vst.msk [vmem:[%s2776_s13 + $0xe0] sm:$0xff] %vm315_vm0, %v1640_v45 }
 0x128   : > { %v1608_v55 = vadd.f32 %v3211_v31, %v1592_v35 }
 0x12a   : > { %v1641_v26 = vadd.f32 %v1625_v46, %v1608_v55 }
 0x12c   : > { %v1919_v4 = vpop.eup %1918  ;;  %1826 = vst.msk [vmem:[%s2776_s13 + $0xe8] sm:$0xff] %vm315_vm0, %v1641_v26 }
 0x12d   : > { %v1561_v15 = vadd.f32 1.0, %v1919_v4 }
 0x12f   : > { %v1577_v39 = vmul.f32 %v1561_v15, %v1449_v20 }
 0x130   : > { %v1921_v58 = vpop.eup %1920 }
 0x131   : > { %v1593_v50 = vmul.f32 %v3198_v47, %v1577_v39  ;;  %v1562_v23 = vadd.f32 1.0, %v1921_v58 }
 0x133   : > { %v1609_v59 = vadd.f32 %v3211_v31, %v1593_v50  ;;  %v1578_v1 = vmul.f32 %v1562_v23, %v1450_v13 }
 0x135   : > { %v1642_v29 = vadd.f32 %v1626_v30, %v1609_v59  ;;  %v1594_v11 = vmul.f32 %v3198_v47, %v1578_v1 }
 0x137   : > { %1827 = vst.msk [vmem:[%s2776_s13 + $0xf0] sm:$0xff] %vm315_vm0, %v1642_v29  ;;  %v1610_v25 = vadd.f32 %v3211_v31, %v1594_v11 }
 0x139   : > { %v1643_v44 = vadd.f32 %v1627_v8, %v1610_v25 }
 0x13b   : > { %1828 = vst.msk [vmem:[%s2776_s13 + $0xf8] sm:$0xff] %vm315_vm0, %v1643_v44 }
 0x13c PF: > { %s15_s20 = sadd.s32 1, %s1960_s20   ;;  %s3483_s18 = smov %s1956_s19 }
 0x13d   : > { %p12_p5 = scmp.ge.s32.totalorder %s15_s20, 4   ;;  %s3484_s19 = smov %s3486_s21 }
 0x13f   :  { %14 = sbr.rel (!%p12_p5) target bundleno = 2 (0x2), region = 87 }

</bundles_post_ra>
